<compile_context>
chip_gen: v7x
topology: tpu7x:2x2x1
jax: 0.10.0
libtpu: 0.0.40
codegen_flags: <defaults>
</compile_context>

<pallas_src>
import math

import jax
import jax.numpy as jnp
import numpy as np
from jax.experimental import pallas as pl
from jax.experimental.pallas import tpu as pltpu  # noqa: F401  (kept per template)

# ---- model config (small, consistent with the module) ----
BATCH = 4
SEQ = 8
HIDDEN = 32
NUM_HEADS = 4
HEAD_DIM = HIDDEN // NUM_HEADS
N_EXPERTS = 2

N_ROWS = BATCH * SEQ                   # 32 fused (batch, seq) rows
N_GROUPS = N_EXPERTS * NUM_HEADS       # 8  (expert, head) projection groups
N_ATTN = N_GROUPS * BATCH              # 32 (expert, head, batch) attention batches


def switch_attn_kernel(xa_ref, mask_ref, gate_ref, wqkv_ref, wo_ref, bo_ref,
                       out_ref):
    """Single invocation: full batch, both experts, heads fused, gated select."""
    f32 = jnp.float32
    xa = xa_ref[...]                                          # (B*S, D+1), ones col folds bias
    inv_sqrt_hd = 1.0 / math.sqrt(HEAD_DIM)

    # ---- fused Q/K/V projection for all (expert, head) groups: 1 dot_general ----
    # Leading dim g = e*H + h, so downstream unpacking is leading-dim indexing
    # and layout-compatible reshapes only (no cross-expert/head lane slicing).
    xb = jnp.broadcast_to(xa[None], (N_GROUPS, N_ROWS, HIDDEN + 1))
    qkv = jnp.einsum("gnd,gdf->gnf", xb, wqkv_ref[...],
                     preferred_element_type=f32)              # (E*H, B*S, 3*hd)

    def head_batched(t):  # (E*H, B*S, hd) -> (E*H*B, S, hd); sublane/leading reshapes only
        return t.reshape(N_GROUPS, BATCH, SEQ, HEAD_DIM).reshape(N_ATTN, SEQ, HEAD_DIM)

    q = head_batched(qkv[:, :, 0 * HEAD_DIM:1 * HEAD_DIM])
    k = head_batched(qkv[:, :, 1 * HEAD_DIM:2 * HEAD_DIM])
    v = head_batched(qkv[:, :, 2 * HEAD_DIM:3 * HEAD_DIM])

    # ---- additive key-padding bias, replicated over (expert, head) groups ----
    bias = (1.0 - mask_ref[...]) * (-1e9)                     # (B, S)
    bias = jnp.broadcast_to(bias[None, :, None, :],
                            (N_GROUPS, BATCH, 1, SEQ)).reshape(N_ATTN, 1, SEQ)

    # ---- head-batched attention: 2 dot_generals cover all experts & heads ----
    s = jnp.einsum("gqd,gkd->gqk", q, k,
                   preferred_element_type=f32) * inv_sqrt_hd  # (E*H*B, S, S)
    s = s + bias
    s = s - jnp.max(s, axis=-1, keepdims=True)                # stable softmax
    p = jnp.exp(s)
    p = p / jnp.sum(p, axis=-1, keepdims=True)                # exact normalization
    ctx = jnp.einsum("gqk,gkd->gqd", p, v,
                     preferred_element_type=f32)              # (E*H*B, S, hd)

    # ---- output projection: contract (head, head_dim) directly — no concat ----
    ctx = ctx.reshape(N_GROUPS, BATCH, SEQ, HEAD_DIM).reshape(N_GROUPS, N_ROWS, HEAD_DIM)
    part = jnp.einsum("gmd,gdo->gmo", ctx, wo_ref[...],
                      preferred_element_type=f32)             # (E*H, B*S, D) partials
    y = jnp.sum(part.reshape(N_EXPERTS, NUM_HEADS, N_ROWS, HIDDEN), axis=1)  # (E, B*S, D)
    y = y + bo_ref[...]                                       # (E, 1, D) broadcast

    # ---- per-batch expert selection (E = 2): gate = 1.0 -> expert 1 ----
    y = y.reshape(N_EXPERTS, BATCH, SEQ, HIDDEN)
    gate = gate_ref[...][:, :, None]                          # (B, 1, 1)
    out = y[0] + gate * (y[1] - y[0])                         # (B, S, D)
    out_ref[...] = out.astype(out_ref.dtype)


def switch_attention_forward(x, attention_mask, params):
    """x: [B, S, D] f32, attention_mask: [B, S] f32 (1=keep, 0=pad)."""
    B, S, D = x.shape
    E, H, HD = N_EXPERTS, NUM_HEADS, HEAD_DIM

    # ---- routing glue (tiny) stays in JAX: route_prob is needed here anyway
    # for the route_prob_max / stop_gradient scaling factor, so moving it into
    # the kernel would only duplicate it. ----
    pooled = jnp.mean(x, axis=1)                                   # (B, D)
    logits = pooled @ params["w_switch"] + params["b_switch"]      # (B, E)
    route_prob = jax.nn.softmax(logits, axis=-1)
    routes = jnp.argmax(route_prob, axis=-1)                       # (B,)
    route_prob_max = jnp.max(route_prob, axis=-1)                  # (B,)
    gate = routes.astype(jnp.float32).reshape(B, 1)                # 1.0 -> expert 1

    # ---- one-time weight packing (pure layout, outside the kernel) ----
    # Group Q/K/V weights by (expert, head) on the leading dim; fold biases in
    # by appending a bias row (matched by the ones column appended to x).
    def aug(w, b):  # (E, D, D), (E, D) -> (E, D+1, H, HD)
        return jnp.concatenate([w, b[:, None, :]], axis=1).reshape(E, D + 1, H, HD)

    wqkv = jnp.stack([aug(params["wq"], params["bq"]),
                      aug(params["wk"], params["bk"]),
                      aug(params["wv"], params["bv"])], axis=3)    # (E, D+1, H, 3, HD)
    wqkv = jnp.transpose(wqkv, (0, 2, 1, 3, 4)).reshape(E * H, D + 1, 3 * HD)

    wo = params["wo"].reshape(E, H, HD, D).reshape(E * H, HD, D)   # (E*H, HD, D)
    bo = params["bo"].reshape(E, 1, D)

    xa = jnp.concatenate([x.reshape(B * S, D),
                          jnp.ones((B * S, 1), x.dtype)], axis=-1)  # (B*S, D+1)

    out = pl.pallas_call(
        switch_attn_kernel,
        out_shape=jax.ShapeDtypeStruct((B, S, D), x.dtype),
    )(xa, attention_mask.astype(jnp.float32), gate, wqkv, wo, bo)

    # scaling_factor = route_prob_max / route_prob_max.detach()  (== 1.0 in fwd).
    # Applied in the wrapper so JAX autodiff reproduces the PyTorch detach trick.
    out = out * (route_prob_max / jax.lax.stop_gradient(route_prob_max))[:, None, None]
    return out


# ---- pure-JAX reference (for correctness check) ----
def reference_forward(x, attention_mask, params):
    B, S, D = x.shape
    pooled = jnp.mean(x, axis=1)
    logits = pooled @ params["w_switch"] + params["b_switch"]
    route_prob = jax.nn.softmax(logits, axis=-1)
    routes = jnp.argmax(route_prob, axis=-1)
    rpm = jnp.max(route_prob, axis=-1)

    wq = params["wq"][routes]; bq = params["bq"][routes]
    wk = params["wk"][routes]; bk = params["bk"][routes]
    wv = params["wv"][routes]; bv = params["bv"][routes]
    wo = params["wo"][routes]; bo = params["bo"][routes]

    q = jnp.einsum("bsd,bde->bse", x, wq) + bq[:, None, :]
    k = jnp.einsum("bsd,bde->bse", x, wk) + bk[:, None, :]
    v = jnp.einsum("bsd,bde->bse", x, wv) + bv[:, None, :]

    def split(t):
        return t.reshape(B, S, NUM_HEADS, HEAD_DIM).transpose(0, 2, 1, 3)

    qh, kh, vh = split(q), split(k), split(v)
    scores = jnp.einsum("bhqd,bhkd->bhqk", qh, kh) / math.sqrt(HEAD_DIM)
    scores = scores + ((1.0 - attention_mask) * -1e9)[:, None, None, :]
    probs = jax.nn.softmax(scores, axis=-1)
    ctx = jnp.einsum("bhqk,bhkd->bhqd", probs, vh)
    ctx = ctx.transpose(0, 2, 1, 3).reshape(B, S, D)
    out = jnp.einsum("bsd,bde->bse", ctx, wo) + bo[:, None, :]
    out = out * (rpm / jax.lax.stop_gradient(rpm))[:, None, None]
    return out


def init_params(key):
    keys = jax.random.split(key, 10)
    s = 0.05
    return {
        "w_switch": s * jax.random.normal(keys[0], (HIDDEN, N_EXPERTS), jnp.float32),
        "b_switch": jnp.zeros((N_EXPERTS,), jnp.float32),
        "wq": s * jax.random.normal(keys[1], (N_EXPERTS, HIDDEN, HIDDEN), jnp.float32),
        "bq": s * jax.random.normal(keys[2], (N_EXPERTS, HIDDEN), jnp.float32),
        "wk": s * jax.random.normal(keys[3], (N_EXPERTS, HIDDEN, HIDDEN), jnp.float32),
        "bk": s * jax.random.normal(keys[4], (N_EXPERTS, HIDDEN), jnp.float32),
        "wv": s * jax.random.normal(keys[5], (N_EXPERTS, HIDDEN, HIDDEN), jnp.float32),
        "bv": s * jax.random.normal(keys[6], (N_EXPERTS, HIDDEN), jnp.float32),
        "wo": s * jax.random.normal(keys[7], (N_EXPERTS, HIDDEN, HIDDEN), jnp.float32),
        "bo": s * jax.random.normal(keys[8], (N_EXPERTS, HIDDEN), jnp.float32),
    }


if __name__ == "__main__":
    key = jax.random.PRNGKey(0)
    kx, km, kp = jax.random.split(key, 3)

    params = init_params(kp)
    x = jax.random.normal(kx, (BATCH, SEQ, HIDDEN), jnp.float32)
    # padding mask: last two positions of every sequence are padding
    attention_mask = jnp.concatenate(
        [jnp.ones((BATCH, SEQ - 2), jnp.float32),
         jnp.zeros((BATCH, 2), jnp.float32)], axis=-1)

    out = switch_attention_forward(x, attention_mask, params)
    out = jax.block_until_ready(out)

    ref = reference_forward(x, attention_mask, params)
    # Exact softmax normalization now -> tight tolerance (only MXU summation-order noise).
    np.testing.assert_allclose(np.asarray(out), np.asarray(ref), rtol=2e-4, atol=2e-5)

    print("KERNEL_OK")
</pallas_src>

<mosaic_0001>
module attributes {stable_mosaic.version = 11 : i64} {
  func.func @switch_attn_kernel(%arg0: memref<32x33xf32, #tpu.memory_space<vmem>>, %arg1: memref<4x8xf32, #tpu.memory_space<vmem>>, %arg2: memref<4x1xf32, #tpu.memory_space<vmem>>, %arg3: memref<8x33x24xf32, #tpu.memory_space<vmem>>, %arg4: memref<8x8x32xf32, #tpu.memory_space<vmem>>, %arg5: memref<2x1x32xf32, #tpu.memory_space<vmem>>, %arg6: memref<4x8x32xf32, #tpu.memory_space<vmem>>) attributes {dimension_semantics = [], scalar_prefetch = 0 : i64, scratch_operands = 0 : i64, tpu.core_type = #tpu.core_type<tc>} {
    %c0 = arith.constant 0 : index
    %c0_0 = arith.constant 0 : index
    %0 = vector.load %arg0[%c0, %c0_0] : memref<32x33xf32, #tpu.memory_space<vmem>>, vector<32x33xf32>
    %1 = vector.shape_cast %0 : vector<32x33xf32> to vector<1x32x33xf32>
    %2 = vector.shape_cast %1 : vector<1x32x33xf32> to vector<1x32x33xf32>
    %3 = vector.broadcast %2 : vector<1x32x33xf32> to vector<8x32x33xf32>
    %c0_1 = arith.constant 0 : index
    %c0_2 = arith.constant 0 : index
    %c0_3 = arith.constant 0 : index
    %4 = vector.load %arg3[%c0_1, %c0_2, %c0_3] : memref<8x33x24xf32, #tpu.memory_space<vmem>>, vector<8x33x24xf32>
    "tpu.trace_start"() <{level = 10 : i32, message = "gnd,gdf->gnf"}> : () -> ()
    %cst = arith.constant dense<0.000000e+00> : vector<8x32x24xf32>
    %5 = tpu.matmul %3, %4, %cst {dimension_numbers = #tpu.dot_dimension_numbers<[2], [1], [1], [2], [0, 0, 0, 1, 1, 2], [0], [0]>} : vector<8x32x33xf32>, vector<8x33x24xf32>, vector<8x32x24xf32> -> vector<8x32x24xf32>
    "tpu.trace_stop"() : () -> ()
    %6 = vector.extract_strided_slice %5 {offsets = [0, 0, 0], sizes = [8, 32, 8], strides = [1, 1, 1]} : vector<8x32x24xf32> to vector<8x32x8xf32>
    %7 = vector.shape_cast %6 : vector<8x32x8xf32> to vector<8x4x8x8xf32>
    %8 = vector.shape_cast %7 : vector<8x4x8x8xf32> to vector<32x8x8xf32>
    %9 = vector.extract_strided_slice %5 {offsets = [0, 0, 8], sizes = [8, 32, 8], strides = [1, 1, 1]} : vector<8x32x24xf32> to vector<8x32x8xf32>
    %10 = vector.shape_cast %9 : vector<8x32x8xf32> to vector<8x4x8x8xf32>
    %11 = vector.shape_cast %10 : vector<8x4x8x8xf32> to vector<32x8x8xf32>
    %12 = vector.extract_strided_slice %5 {offsets = [0, 0, 16], sizes = [8, 32, 8], strides = [1, 1, 1]} : vector<8x32x24xf32> to vector<8x32x8xf32>
    %13 = vector.shape_cast %12 : vector<8x32x8xf32> to vector<8x4x8x8xf32>
    %14 = vector.shape_cast %13 : vector<8x4x8x8xf32> to vector<32x8x8xf32>
    %c0_4 = arith.constant 0 : index
    %c0_5 = arith.constant 0 : index
    %15 = vector.load %arg1[%c0_4, %c0_5] : memref<4x8xf32, #tpu.memory_space<vmem>>, vector<4x8xf32>
    %cst_6 = arith.constant 1.000000e+00 : f32
    %16 = vector.broadcast %cst_6 : f32 to vector<4x8xf32>
    %17 = arith.subf %16, %15 : vector<4x8xf32>
    %cst_7 = arith.constant -1.000000e+09 : f32
    %18 = vector.broadcast %cst_7 : f32 to vector<4x8xf32>
    %19 = arith.mulf %17, %18 : vector<4x8xf32>
    %20 = vector.shape_cast %19 : vector<4x8xf32> to vector<1x4x1x8xf32>
    %21 = vector.shape_cast %20 : vector<1x4x1x8xf32> to vector<1x4x1x8xf32>
    %22 = vector.broadcast %21 : vector<1x4x1x8xf32> to vector<8x4x1x8xf32>
    %23 = vector.shape_cast %22 : vector<8x4x1x8xf32> to vector<32x1x8xf32>
    "tpu.trace_start"() <{level = 10 : i32, message = "gqd,gkd->gqk"}> : () -> ()
    %cst_8 = arith.constant dense<0.000000e+00> : vector<32x8x8xf32>
    %24 = tpu.matmul %8, %11, %cst_8 {dimension_numbers = #tpu.dot_dimension_numbers<[2], [2], [1], [1], [0, 0, 0, 1, 1, 1], [0], [0]>} : vector<32x8x8xf32>, vector<32x8x8xf32>, vector<32x8x8xf32> -> vector<32x8x8xf32>
    "tpu.trace_stop"() : () -> ()
    %cst_9 = arith.constant 0.353553385 : f32
    %25 = vector.broadcast %cst_9 : f32 to vector<32x8x8xf32>
    %26 = arith.mulf %24, %25 : vector<32x8x8xf32>
    %27 = vector.broadcast %23 : vector<32x1x8xf32> to vector<32x8x8xf32>
    %28 = arith.addf %26, %27 : vector<32x8x8xf32>
    %cst_10 = arith.constant dense<0xFF800000> : vector<32x8xf32>
    %29 = vector.multi_reduction <maximumf>, %28, %cst_10 [2] : vector<32x8x8xf32> to vector<32x8xf32>
    %30 = vector.shape_cast %29 : vector<32x8xf32> to vector<32x8x1xf32>
    %31 = vector.broadcast %30 : vector<32x8x1xf32> to vector<32x8x8xf32>
    %32 = arith.subf %28, %31 : vector<32x8x8xf32>
    %33 = math.exp %32 : vector<32x8x8xf32>
    %cst_11 = arith.constant dense<0.000000e+00> : vector<32x8xf32>
    %34 = vector.multi_reduction <add>, %33, %cst_11 [2] : vector<32x8x8xf32> to vector<32x8xf32>
    %35 = vector.shape_cast %34 : vector<32x8xf32> to vector<32x8x1xf32>
    %36 = vector.broadcast %35 : vector<32x8x1xf32> to vector<32x8x8xf32>
    %37 = arith.divf %33, %36 : vector<32x8x8xf32>
    "tpu.trace_start"() <{level = 10 : i32, message = "gqk,gkd->gqd"}> : () -> ()
    %cst_12 = arith.constant dense<0.000000e+00> : vector<32x8x8xf32>
    %38 = tpu.matmul %37, %14, %cst_12 {dimension_numbers = #tpu.dot_dimension_numbers<[2], [1], [1], [2], [0, 0, 0, 1, 1, 2], [0], [0]>} : vector<32x8x8xf32>, vector<32x8x8xf32>, vector<32x8x8xf32> -> vector<32x8x8xf32>
    "tpu.trace_stop"() : () -> ()
    %39 = vector.shape_cast %38 : vector<32x8x8xf32> to vector<8x4x8x8xf32>
    %40 = vector.shape_cast %39 : vector<8x4x8x8xf32> to vector<8x32x8xf32>
    %c0_13 = arith.constant 0 : index
    %c0_14 = arith.constant 0 : index
    %c0_15 = arith.constant 0 : index
    %41 = vector.load %arg4[%c0_13, %c0_14, %c0_15] : memref<8x8x32xf32, #tpu.memory_space<vmem>>, vector<8x8x32xf32>
    "tpu.trace_start"() <{level = 10 : i32, message = "gmd,gdo->gmo"}> : () -> ()
    %cst_16 = arith.constant dense<0.000000e+00> : vector<8x32x32xf32>
    %42 = tpu.matmul %40, %41, %cst_16 {dimension_numbers = #tpu.dot_dimension_numbers<[2], [1], [1], [2], [0, 0, 0, 1, 1, 2], [0], [0]>} : vector<8x32x8xf32>, vector<8x8x32xf32>, vector<8x32x32xf32> -> vector<8x32x32xf32>
    "tpu.trace_stop"() : () -> ()
    %43 = vector.shape_cast %42 : vector<8x32x32xf32> to vector<2x4x32x32xf32>
    %cst_17 = arith.constant dense<0.000000e+00> : vector<2x32x32xf32>
    %44 = vector.multi_reduction <add>, %43, %cst_17 [1] : vector<2x4x32x32xf32> to vector<2x32x32xf32>
    %c0_18 = arith.constant 0 : index
    %c0_19 = arith.constant 0 : index
    %c0_20 = arith.constant 0 : index
    %45 = vector.load %arg5[%c0_18, %c0_19, %c0_20] : memref<2x1x32xf32, #tpu.memory_space<vmem>>, vector<2x1x32xf32>
    %46 = vector.broadcast %45 : vector<2x1x32xf32> to vector<2x32x32xf32>
    %47 = arith.addf %44, %46 : vector<2x32x32xf32>
    %48 = vector.shape_cast %47 : vector<2x32x32xf32> to vector<2x4x8x32xf32>
    %c0_21 = arith.constant 0 : index
    %c0_22 = arith.constant 0 : index
    %49 = vector.load %arg2[%c0_21, %c0_22] : memref<4x1xf32, #tpu.memory_space<vmem>>, vector<4x1xf32>
    %50 = vector.shape_cast %49 : vector<4x1xf32> to vector<4x1x1xf32>
    %51 = vector.extract_strided_slice %48 {offsets = [0, 0, 0, 0], sizes = [1, 4, 8, 32], strides = [1, 1, 1, 1]} : vector<2x4x8x32xf32> to vector<1x4x8x32xf32>
    %52 = vector.shape_cast %51 : vector<1x4x8x32xf32> to vector<4x8x32xf32>
    %53 = vector.extract_strided_slice %48 {offsets = [1, 0, 0, 0], sizes = [1, 4, 8, 32], strides = [1, 1, 1, 1]} : vector<2x4x8x32xf32> to vector<1x4x8x32xf32>
    %54 = vector.shape_cast %53 : vector<1x4x8x32xf32> to vector<4x8x32xf32>
    %55 = vector.extract_strided_slice %48 {offsets = [0, 0, 0, 0], sizes = [1, 4, 8, 32], strides = [1, 1, 1, 1]} : vector<2x4x8x32xf32> to vector<1x4x8x32xf32>
    %56 = vector.shape_cast %55 : vector<1x4x8x32xf32> to vector<4x8x32xf32>
    %57 = arith.subf %54, %56 : vector<4x8x32xf32>
    %58 = vector.broadcast %50 : vector<4x1x1xf32> to vector<4x8x32xf32>
    %59 = arith.mulf %58, %57 : vector<4x8x32xf32>
    %60 = arith.addf %52, %59 : vector<4x8x32xf32>
    %c0_23 = arith.constant 0 : index
    %c0_24 = arith.constant 0 : index
    %c0_25 = arith.constant 0 : index
    %61 = vector.load %arg6[%c0_23, %c0_24, %c0_25] : memref<4x8x32xf32, #tpu.memory_space<vmem>>, vector<4x8x32xf32>
    tpu.vector_store %arg6[%c0_23, %c0_24, %c0_25], %60 {strides = array<i32>} : memref<4x8x32xf32, #tpu.memory_space<vmem>>, vector<4x8x32xf32>,
    return
  }
}

</mosaic_0001>

<bundles_post_ra>
// kernel: tpu_custom_call.1
= control target key start
LH: loop header
LB: loop body
LE: loop exit
PB: predicated region body
PF: predicated region fallthrough
CT: control target
= control target key end

     0   :  { %vm68_vm0 = vcmask 269312   ;;  %vm81_vm1 = vcmask 1040384   ;;  %s9603_s0 = inlined_call_operand.vmem [shape: f32[32,33], index: 0, kind: input, shape index: {}]   ;;  %s9604_s1 = inlined_call_operand.vmem [shape: f32[4,8], index: 1, kind: input, shape index: {}]   ;;  %s9605_s2 = inlined_call_operand.vmem [shape: f32[4,1], index: 2, kind: input, shape index: {}]   ;;  %s9606_s3 = inlined_call_operand.vmem [shape: f32[8,33,24], index: 3, kind: input, shape index: {}]   ;;  %s9607_s4 = inlined_call_operand.vmem [shape: f32[8,8,32], index: 4, kind: input, shape index: {}]   ;;  %s9608_s5 = inlined_call_operand.vmem [shape: f32[2,1,32], index: 5, kind: input, shape index: {}]   ;;  %s9609_s6 = inlined_call_operand.hbm [shape: f32[4,8,32], index: 6, kind: output, shape index: {}]  }
   0x1   :  { %v28_v0 = vld [vmem:[%s9606_s3] sm:$0xff]  ;;  %v29_v1 = vld [vmem:[%s9606_s3 + $0x8] sm:$0xff]  ;;  %v30_v2 = vld [vmem:[%s9606_s3 + $0x10] sm:$0xff] }
   0x2   :  { %v8023_v3 = vpack.c.bf16 %v29_v1, %v28_v0  ;;  %v31_v4 = vld [vmem:[%s9606_s3 + $0x18] sm:$0xff]  ;;  %v33_v5 = vld [vmem:[%s9606_s3 + $0x28] sm:$0xff]  ;;  %v34_v7 = vld [vmem:[%s9606_s3 + $0x30] sm:$0xff] }
   0x3   :  { %v8027_v6 = vpack.c.bf16 %v31_v4, %v30_v2  ;;  %v8315_v8 = vld [vmem:[%s9603_s0] sm:$0xff]  ;;  %v8031_v9 = vpack.c.bf16 %v34_v7, %v33_v5  ;;  %v35_v10 = vld [vmem:[%s9606_s3 + $0x38] sm:$0xff]  ;;  %v38_v14 = vld [vmem:[%s9606_s3 + $0x50] sm:$0xff] }
   0x4   :  { %8024 = vmatprep.subr.bf16.mxu0 %v8023_v3  ;;  %7521 = vmatprep.mubr.msk.f32.mxu0 %vm68_vm0, %v8315_v8  ;;  %v36_v11 = vld [vmem:[%s9606_s3 + $0x40] sm:$0xff]  ;;  %v39_v15 = vld [vmem:[%s9606_s3 + $0x58] sm:$0xff]  ;;  %v37_v16 = vld [vmem:[%s9606_s3 + $0x48] sm:$0x1] }
   0x5   :  { %8026 = vmatpush3.bf16.msra.mxu0 %v8023_v3  ;;  %v8035_v12 = vpack.c.bf16 %v36_v11, %v35_v10  ;;  %7537 = vmatprep.mubr.msk.f32.mxu1 %vm68_vm0, %v8315_v8  ;;  %v32_v13 = vld [vmem:[%s9606_s3 + $0x20] sm:$0x1]  ;;  %v8039_v17 = vpack.c.bf16 %v39_v15, %v38_v14  ;;  %v41_v19 = vld [vmem:[%s9606_s3 + $0x68] sm:$0xff]  ;;  %v43_v21 = vld [vmem:[%s9606_s3 + $0x78] sm:$0xff] }
   0x6   :  { %8028 = vmatprep.subr.bf16.mxu0 %v8027_v6  ;;  %8032 = vmatprep.subr.bf16.mxu1 %v8031_v9  ;;  %v40_v18 = vld [vmem:[%s9606_s3 + $0x60] sm:$0xff]  ;;  %v8349_v20 = vld [vmem:[%s9603_s0 + $0x8] sm:$0xff]  ;;  %v8360_v23 = vld [vmem:[%s9603_s0 + $0x10] sm:$0xff] }
   0x7   :  { %8034 = vmatpush3.bf16.msra.mxu1 %v8031_v9  ;;  %v44_v22 = vld [vmem:[%s9606_s3 + $0x80] sm:$0xff]  ;;  %v8043_v24 = vpack.c.bf16 %v41_v19, %v40_v18  ;;  %v45_v26 = vld [vmem:[%s9606_s3 + $0x88] sm:$0xff]  ;;  %v46_v27 = vld [vmem:[%s9606_s3 + $0x90] sm:$0xff] }
   0x8   :  { %8036 = vmatprep.subr.bf16.mxu1 %v8035_v12  ;;  %v8047_v25 = vpack.c.bf16 %v44_v22, %v43_v21  ;;  %v8377_v28 = vld [vmem:[%s9603_s0 + $0x18] sm:$0xff] }
   0x9   :  { %8030 = vmatpush3.bf16.msra.mxu0 %v8027_v6 }
   0xa   :  { %7519 = vmatprep.subr.msk.mxu0 %vm81_vm1, %v32_v13 }
   0xb   :  { %8038 = vmatpush3.bf16.msra.mxu1 %v8035_v12 }
   0xc   :  { %7535 = vmatprep.subr.msk.mxu1 %vm81_vm1, %v37_v16 }
   0xd   :  { %7520 = vmatpush3.msk.msra.mxu0 %vm81_vm1, %v32_v13 }
   0xe   :  { %7522 = vmatmul.mubr.msk.f32.vlgmr.msra.gmra.mrb[0].mxu0 %vm68_vm0, %v8349_v20  ;;  %8040 = vmatprep.subr.bf16.mxu0 %v8039_v17 }
   0xf   :  { %7524 = vmatprep.mubr.msk.f32.mxu0 %vm68_vm0, %v8360_v23  ;;  %7536 = vmatpush3.msk.msra.mxu1 %vm81_vm1, %v37_v16 }
  0x10   :  { %11 = vsyncpa [#allocation3], 0  ;;  %8042 = vmatpush3.bf16.msra.mxu0 %v8039_v17  ;;  %7538 = vmatmul.mubr.msk.f32.vlgmr.msra.gmra.mrb[0].mxu1 %vm68_vm0, %v8349_v20  ;;  %v8051_v29 = vpack.c.bf16 %v46_v27, %v45_v26  ;;  %v42_v30 = vld [vmem:[%s9606_s3 + $0x70] sm:$0x1]  ;;  %v48_v31 = vld [vmem:[%s9606_s3 + $0xa0] sm:$0xff]  ;;  %v9610_v60 = vmov 0.0  }
  0x11   :  { %8044 = vmatprep.subr.bf16.mxu0 %v8043_v24  ;;  %7540 = vmatprep.mubr.msk.f32.mxu1 %vm68_vm0, %v8360_v23  ;;  %v49_v32 = vld [vmem:[%s9606_s3 + $0xa8] sm:$0xff]  ;;  %v50_v33 = vld [vmem:[%s9606_s3 + $0xb0] sm:$0xff]  ;;  %v51_v34 = vld [vmem:[%s9606_s3 + $0xb8] sm:$0xff]  ;;  %vm8251_vm2 = vmmov 0   ;;  %s8253_s11 = smov 112   ;;  %vm817_vm3 = vcmask 64512  }
  0x12   :  { %7525 = vmatmul.mubr.msk.f32.gmra.mrb[2].mxu0 %vm68_vm0, %v8377_v28  ;;  %8048 = vmatprep.subr.bf16.mxu1 %v8047_v25  ;;  %v47_v35 = vld [vmem:[%s9606_s3 + $0x98] sm:$0x1]  ;;  %v8055_v36 = vpack.c.bf16 %v49_v32, %v48_v31  ;;  %v53_v37 = vld [vmem:[%s9606_s3 + $0xc8] sm:$0xff]  ;;  %v54_v38 = vld [vmem:[%s9606_s3 + $0xd0] sm:$0xff]  ;;  %v8059_v39 = vpack.c.bf16 %v51_v34, %v50_v33  ;;  %vm6931_vm4 = vcmask 261120  }
  0x13   :  { %7553 = vmatprep.mubr.msk.f32.mxu0 %vm68_vm0, %v8315_v8  ;;  %8050 = vmatpush3.bf16.msra.mxu1 %v8047_v25  ;;  %v8063_v40 = vpack.c.bf16 %v54_v38, %v53_v37  ;;  %v55_v41 = vld [vmem:[%s9606_s3 + $0xd8] sm:$0xff]  ;;  %v56_v42 = vld [vmem:[%s9606_s3 + $0xe0] sm:$0xff]  ;;  %v58_v45 = vld [vmem:[%s9606_s3 + $0xf0] sm:$0xff] }
  0x14   :  { %8046 = vmatpush3.bf16.msra.mxu0 %v8043_v24  ;;  %7541 = vmatmul.mubr.msk.f32.gmra.mrb[2].mxu1 %vm68_vm0, %v8377_v28  ;;  %v52_v43 = vld [vmem:[%s9606_s3 + $0xc0] sm:$0x1]  ;;  %v8067_v44 = vpack.c.bf16 %v56_v42, %v55_v41  ;;  %v59_v46 = vld [vmem:[%s9606_s3 + $0xf8] sm:$0xff]  ;;  %v57_v47 = vld [vmem:[%s9606_s3 + $0xe8] sm:$0x1] }
  0x15   :  { %7551 = vmatprep.subr.msk.mxu0 %vm81_vm1, %v42_v30  ;;  %8052 = vmatprep.subr.bf16.mxu1 %v8051_v29  ;;  %v8071_v48 = vpack.c.bf16 %v59_v46, %v58_v45  ;;  %v60_v49 = vld [vmem:[%s9606_s3 + $0x100] sm:$0xff]  ;;  %v61_v50 = vld [vmem:[%s9606_s3 + $0x108] sm:$0xff]  ;;  %v63_v51 = vld [vmem:[%s9606_s3 + $0x118] sm:$0xff] }
  0x16   :  { %7569 = vmatprep.mubr.msk.f32.mxu1 %vm68_vm0, %v8315_v8  ;;  %v64_v52 = vld [vmem:[%s9606_s3 + $0x120] sm:$0xff]  ;;  %v8075_v53 = vpack.c.bf16 %v61_v50, %v60_v49  ;;  %v65_v55 = vld [vmem:[%s9606_s3 + $0x128] sm:$0xff]  ;;  %v66_v56 = vld [vmem:[%s9606_s3 + $0x130] sm:$0xff] }
  0x17   :  { %8054 = vmatpush3.bf16.msra.mxu1 %v8051_v29  ;;  %v8079_v54 = vpack.c.bf16 %v64_v52, %v63_v51  ;;  %v62_v57 = vld [vmem:[%s9606_s3 + $0x110] sm:$0x1]  ;;  %v8083_v58 = vpack.c.bf16 %v66_v56, %v65_v55  ;;  %v67_v59 = vld [vmem:[%s9606_s3 + $0x138] sm:$0x1]  ;;  %s8252_s3 = smov 120  }
  0x18   :  { %7552 = vmatpush3.msk.msra.mxu0 %vm81_vm1, %v42_v30  ;;  %7567 = vmatprep.subr.msk.mxu1 %vm81_vm1, %v47_v35 }
  0x19   :  { %7554 = vmatmul.mubr.msk.f32.vlgmr.msra.gmra.mrb[4].mxu0 %vm68_vm0, %v8349_v20  ;;  %8056 = vmatprep.subr.bf16.mxu0 %v8055_v36 }
  0x1a   :  { %7556 = vmatprep.mubr.msk.f32.mxu0 %vm68_vm0, %v8360_v23  ;;  %8058 = vmatpush3.bf16.msra.mxu0 %v8055_v36 }
  0x1b   :  { %7568 = vmatpush3.msk.msra.mxu1 %vm81_vm1, %v47_v35  ;;  %8060 = vmatprep.subr.bf16.mxu0 %v8059_v39 }
  0x1c   :  { %7570 = vmatmul.mubr.msk.f32.vlgmr.msra.gmra.mrb[4].mxu1 %vm68_vm0, %v8349_v20  ;;  %8064 = vmatprep.subr.bf16.mxu1 %v8063_v40 }
  0x1d   :  { %7557 = vmatmul.mubr.msk.f32.gmra.mrb[6].mxu0 %vm68_vm0, %v8377_v28  ;;  %7572 = vmatprep.mubr.msk.f32.mxu1 %vm68_vm0, %v8360_v23 }
  0x1e   :  { %8062 = vmatpush3.bf16.msra.mxu0 %v8059_v39  ;;  %7585 = vmatprep.mubr.msk.f32.mxu0 %vm68_vm0, %v8315_v8 }
  0x1f   :  { %7583 = vmatprep.subr.msk.mxu0 %vm81_vm1, %v52_v43  ;;  %8066 = vmatpush3.bf16.msra.mxu1 %v8063_v40 }
  0x20   :  { %7573 = vmatmul.mubr.msk.f32.gmra.mrb[6].mxu1 %vm68_vm0, %v8377_v28  ;;  %8068 = vmatprep.subr.bf16.mxu1 %v8067_v44 }
  0x21   :  { %7601 = vmatprep.mubr.msk.f32.mxu1 %vm68_vm0, %v8315_v8 }
  0x22   :  { %7584 = vmatpush3.msk.msra.mxu0 %vm81_vm1, %v52_v43 }
  0x23   :  { %7586 = vmatmul.mubr.msk.f32.vlgmr.msra.gmra.mrb[8].mxu0 %vm68_vm0, %v8349_v20  ;;  %8070 = vmatpush3.bf16.msra.mxu1 %v8067_v44 }
  0x24   :  { %7588 = vmatprep.mubr.msk.f32.mxu0 %vm68_vm0, %v8360_v23  ;;  %7599 = vmatprep.subr.msk.mxu1 %vm81_vm1, %v57_v47 }
  0x25   :  { %8072 = vmatprep.subr.bf16.mxu0 %v8071_v48 }
  0x26   :  { %8074 = vmatpush3.bf16.msra.mxu0 %v8071_v48 }
  0x27   :  { %7589 = vmatmul.mubr.msk.f32.gmra.mrb[10].mxu0 %vm68_vm0, %v8377_v28  ;;  %7600 = vmatpush3.msk.msra.mxu1 %vm81_vm1, %v57_v47 }
  0x28   :  { %7602 = vmatmul.mubr.msk.f32.vlgmr.msra.gmra.mrb[8].mxu1 %vm68_vm0, %v8349_v20  ;;  %8076 = vmatprep.subr.bf16.mxu0 %v8075_v53 }
  0x29   :  { %7604 = vmatprep.mubr.msk.f32.mxu1 %vm68_vm0, %v8360_v23  ;;  %8080 = vmatprep.subr.bf16.mxu1 %v8079_v54 }
  0x2a   :  { %8078 = vmatpush3.bf16.msra.mxu0 %v8075_v53  ;;  %7617 = vmatprep.mubr.msk.f32.mxu0 %vm68_vm0, %v8315_v8 }
  0x2b   :  { %7615 = vmatprep.subr.msk.mxu0 %vm81_vm1, %v62_v57  ;;  %8082 = vmatpush3.bf16.msra.mxu1 %v8079_v54 }
  0x2c   :  { %7605 = vmatmul.mubr.msk.f32.gmra.mrb[10].mxu1 %vm68_vm0, %v8377_v28  ;;  %8084 = vmatprep.subr.bf16.mxu1 %v8083_v58 }
  0x2d   :  { %7633 = vmatprep.mubr.msk.f32.mxu1 %vm68_vm0, %v8315_v8 }
  0x2e   :  { %7616 = vmatpush3.msk.msra.mxu0 %vm81_vm1, %v62_v57 }
  0x2f   :  { %7618 = vmatmul.mubr.msk.f32.vlgmr.msra.gmra.mrb[12].mxu0 %vm68_vm0, %v8349_v20  ;;  %8086 = vmatpush3.bf16.msra.mxu1 %v8083_v58 }
  0x30   :  { %7620 = vmatprep.mubr.msk.f32.mxu0 %vm68_vm0, %v8360_v23  ;;  %7631 = vmatprep.subr.msk.mxu1 %vm81_vm1, %v67_v59 }
  0x31   :  { %7639 = vmatprep.subr.mxu0 %v9610_v60 }
  0x33   :  { %7621 = vmatmul.mubr.msk.f32.gmra.mrb[14].mxu0 %vm68_vm0, %v8377_v28  ;;  %7632 = vmatpush3.msk.msra.mxu1 %vm81_vm1, %v67_v59 }
  0x34   :  { %7634 = vmatmul.mubr.msk.f32.vlgmr.msra.gmra.mrb[12].mxu1 %vm68_vm0, %v8349_v20  ;;  %7644 = vmatprep.subr.mxu1 %v9610_v60 }
  0x35   :  { %7636 = vmatprep.mubr.msk.f32.mxu1 %vm68_vm0, %v8360_v23  ;;  %7641 = vmatprep.mubr.msk.f32.mxu0 %vm8251_vm2, %v9610_v60 }
  0x38   :  { %7637 = vmatmul.mubr.msk.f32.gmra.mrb[14].mxu1 %vm68_vm0, %v8377_v28 }
  0x39   :  { %7646 = vmatprep.mubr.msk.f32.mxu1 %vm8251_vm2, %v9610_v60 }
  0xe1   :  { %v8520_v61 = vpop.f32.mrb[0].mxu0 }
  0xe2   :  { %v8522_v62 = vpop.f32.mrb[1].mxu0 }
  0xe3   :  { %815 = vrot.lane.b32.xlu0 %v8522_v62, %s8252_s3  ;;  %v8526_v63 = vpop.f32.mrb[0].mxu1 }
  0xe4   :  { %v8528_v0 = vpop.f32.mrb[1].mxu1 }
  0xe5   :  { %v8530_v1 = vpop.f32.mrb[2].mxu0 }
  0xe6   :  { %v8532_v2 = vpop.f32.mrb[3].mxu0 }
  0xe7   :  { %893 = vrot.lane.b32.xlu0 %v8520_v61, %s8252_s3  ;;  %970 = vrot.lane.b32.xlu1 %v8532_v2, %s8252_s3  ;;  %v8538_v3 = vpop.f32.mrb[2].mxu1 }
  0xe8   :  { %v8540_v4 = vpop.f32.mrb[3].mxu1 }
  0xeb   :  { %1124 = vrot.lane.b32.xlu0 %v8528_v0, %s8252_s3  ;;  %1047 = vrot.lane.b32.xlu1 %v8530_v1, %s8252_s3 }
  0xec   :  { %v8546_v5 = vpop.f32.mrb[4].mxu0 }
  0xed   :  { %v8548_v6 = vpop.f32.mrb[5].mxu0 }
  0xef   :  { %1278 = vrot.lane.b32.xlu0 %v8540_v4, %s8252_s3  ;;  %1201 = vrot.lane.b32.xlu1 %v8526_v63, %s8252_s3  ;;  %v8554_v7 = vpop.f32.mrb[4].mxu1 }
  0xf0   :  { %v8556_v8 = vpop.f32.mrb[6].mxu0  ;;  %v8558_v9 = vpop.f32.mrb[5].mxu1 }
  0xf1   :  { %v8560_v10 = vpop.f32.mrb[7].mxu0 }
  0xf3   :  { %1355 = vrot.lane.b32.xlu1 %v8538_v3, %s8252_s3  ;;  %1432 = vrot.lane.b32.xlu0 %v8548_v6, %s8252_s3  ;;  %v8566_v11 = vpop.f32.mrb[6].mxu1 }
  0xf4   :  { %v8568_v12 = vpop.f32.mrb[7].mxu1 }
  0xf6   :  { %v8570_v13 = vpop.f32.mrb[8].mxu0 }
  0xf7   :  { %1509 = vrot.lane.b32.xlu1 %v8546_v5, %s8252_s3  ;;  %1586 = vrot.lane.b32.xlu0 %v8560_v10, %s8252_s3  ;;  %v8576_v14 = vpop.f32.mrb[9].mxu0 }
  0xfa   :  { %v8578_v15 = vpop.f32.mrb[10].mxu0 }
  0xfb   :  { %1663 = vrot.lane.b32.xlu1 %v8556_v8, %s8252_s3  ;;  %1740 = vrot.lane.b32.xlu0 %v8558_v9, %s8252_s3  ;;  %v8584_v16 = vpop.f32.mrb[11].mxu0  ;;  %v8586_v17 = vpop.f32.mrb[8].mxu1 }
  0xfc   :  { %v8588_v18 = vpop.f32.mrb[9].mxu1 }
  0xff   :  { %1817 = vrot.lane.b32.xlu1 %v8554_v7, %s8252_s3  ;;  %1894 = vrot.lane.b32.xlu0 %v8568_v12, %s8252_s3  ;;  %v8594_v19 = vpop.f32.mrb[10].mxu1 }
 0x100   :  { %v8596_v20 = vpop.f32.mrb[11].mxu1 }
 0x102   :  { %v8598_v21 = vpop.f32.mrb[12].mxu0 }
 0x103   :  { %1971 = vrot.lane.b32.xlu1 %v8566_v11, %s8252_s3  ;;  %2048 = vrot.lane.b32.xlu0 %v8576_v14, %s8252_s3  ;;  %v8604_v22 = vpop.f32.mrb[13].mxu0 }
 0x106   :  { %v8606_v23 = vpop.f32.mrb[14].mxu0 }
 0x107   :  { %2125 = vrot.lane.b32.xlu1 %v8570_v13, %s8252_s3  ;;  %2202 = vrot.lane.b32.xlu0 %v8584_v16, %s8252_s3  ;;  %v8612_v24 = vpop.f32.mrb[15].mxu0  ;;  %v8614_v25 = vpop.f32.mrb[12].mxu1 }
 0x108   :  { %v8616_v26 = vpop.f32.mrb[13].mxu1 }
 0x10b   :  { %2279 = vrot.lane.b32.xlu1 %v8578_v15, %s8252_s3  ;;  %2356 = vrot.lane.b32.xlu0 %v8588_v18, %s8252_s3  ;;  %v8622_v27 = vpop.f32.mrb[14].mxu1 }
 0x10c   :  { %v8624_v28 = vpop.f32.mrb[15].mxu1 }
 0x10f   :  { %2433 = vrot.lane.b32.xlu1 %v8586_v17, %s8252_s3  ;;  %2510 = vrot.lane.b32.xlu0 %v8596_v20, %s8252_s3 }
 0x113   :  { %2587 = vrot.lane.b32.xlu1 %v8594_v19, %s8252_s3  ;;  %2664 = vrot.lane.b32.xlu0 %v8604_v22, %s8252_s3 }
 0x117   :  { %2741 = vrot.lane.b32.xlu1 %v8598_v21, %s8252_s3  ;;  %2818 = vrot.lane.b32.xlu0 %v8612_v24, %s8252_s3 }
 0x11b   :  { %2895 = vrot.lane.b32.xlu1 %v8606_v23, %s8252_s3  ;;  %2972 = vrot.lane.b32.xlu0 %v8616_v26, %s8252_s3 }
 0x11f   :  { %3049 = vrot.lane.b32.xlu1 %v8614_v25, %s8252_s3  ;;  %3126 = vrot.lane.b32.xlu0 %v8624_v28, %s8252_s3 }
 0x123   :  { %3203 = vrot.lane.b32.xlu1 %v8622_v27, %s8252_s3  ;;  %3791 = vrot.lane.b32.xlu0 %v8520_v61, %s8253_s11 }
 0x127   :  { %3715 = vrot.lane.b32.xlu1 %v8522_v62, %s8253_s11  ;;  %3943 = vrot.lane.b32.xlu0 %v8530_v1, %s8253_s11 }
 0x12b   :  { %3867 = vrot.lane.b32.xlu1 %v8532_v2, %s8253_s11  ;;  %4095 = vrot.lane.b32.xlu0 %v8526_v63, %s8253_s11 }
 0x12f   :  { %4019 = vrot.lane.b32.xlu1 %v8528_v0, %s8253_s11  ;;  %4247 = vrot.lane.b32.xlu0 %v8538_v3, %s8253_s11 }
 0x133   :  { %4171 = vrot.lane.b32.xlu1 %v8540_v4, %s8253_s11  ;;  %4399 = vrot.lane.b32.xlu0 %v8546_v5, %s8253_s11 }
 0x137   :  { %4323 = vrot.lane.b32.xlu1 %v8548_v6, %s8253_s11  ;;  %4551 = vrot.lane.b32.xlu0 %v8556_v8, %s8253_s11 }
 0x13b   :  { %4475 = vrot.lane.b32.xlu1 %v8560_v10, %s8253_s11  ;;  %4703 = vrot.lane.b32.xlu0 %v8554_v7, %s8253_s11 }
 0x13f   :  { %4627 = vrot.lane.b32.xlu1 %v8558_v9, %s8253_s11  ;;  %4855 = vrot.lane.b32.xlu0 %v8566_v11, %s8253_s11 }
 0x143   :  { %4779 = vrot.lane.b32.xlu1 %v8568_v12, %s8253_s11  ;;  %5007 = vrot.lane.b32.xlu0 %v8570_v13, %s8253_s11 }
 0x147   :  { %4931 = vrot.lane.b32.xlu1 %v8576_v14, %s8253_s11  ;;  %5159 = vrot.lane.b32.xlu0 %v8578_v15, %s8253_s11 }
 0x14b   :  { %5083 = vrot.lane.b32.xlu1 %v8584_v16, %s8253_s11  ;;  %5387 = vrot.lane.b32.xlu0 %v8596_v20, %s8253_s11 }
 0x14f   :  { %5235 = vrot.lane.b32.xlu1 %v8588_v18, %s8253_s11  ;;  %5539 = vrot.lane.b32.xlu0 %v8604_v22, %s8253_s11 }
 0x153   :  { %5311 = vrot.lane.b32.xlu1 %v8586_v17, %s8253_s11  ;;  %5691 = vrot.lane.b32.xlu0 %v8612_v24, %s8253_s11 }
 0x155   :  { %v816_v29 = vpop.permute.xlu0 %815 }
 0x156   :  { %7640 = vmatpush3.xpose.msk.msra.mxu0 %vm817_vm3, %v816_v29 }
 0x157   :  { %5463 = vrot.lane.b32.xlu1 %v8594_v19, %s8253_s11  ;;  %7649 = vmatprep.subr.mxu0 %v9610_v60 }
 0x159   :  { %7642 = vmatmul.mubr.msk.f32.vlgmr.msra.gmra.mrb[16].mxu0 %vm817_vm3, %v8522_v62  ;;  %v894_v30 = vpop.permute.xlu0 %893  ;;  %v971_v31 = vpop.permute.xlu1 %970 }
 0x15a   :  { %7645 = vmatpush3.xpose.msk.msra.mxu1 %vm817_vm3, %v894_v30  ;;  %7650 = vmatpush3.xpose.msk.msra.mxu0 %vm817_vm3, %v971_v31 }
 0x15b   :  { %5615 = vrot.lane.b32.xlu1 %v8598_v21, %s8253_s11  ;;  %7651 = vmatprep.mubr.msk.f32.mxu0 %vm8251_vm2, %v9610_v60 }
 0x15c   :  { %7654 = vmatprep.subr.mxu1 %v9610_v60  ;;  %7659 = vmatprep.subr.mxu0 %v9610_v60 }
 0x15d   :  { %7647 = vmatmul.mubr.msk.f32.vlgmr.msra.gmra.mrb[16].mxu1 %vm817_vm3, %v8520_v61  ;;  %v1125_v32 = vpop.permute.xlu0 %1124  ;;  %7652 = vmatmul.mubr.msk.f32.vlgmr.msra.gmra.mrb[18].mxu0 %vm817_vm3, %v8532_v2  ;;  %v1048_v33 = vpop.permute.xlu1 %1047  ;;  %v793_v2 = vlaneseq }
 0x15e   :  { %7655 = vmatpush3.xpose.msk.msra.mxu1 %vm817_vm3, %v1048_v33  ;;  %7660 = vmatpush3.xpose.msk.msra.mxu0 %vm817_vm3, %v1125_v32 }
 0x15f   :  { %5767 = vrot.lane.b32.xlu1 %v8606_v23, %s8253_s11  ;;  %7656 = vmatprep.mubr.msk.f32.mxu1 %vm8251_vm2, %v9610_v60 }
 0x160   :  { %7661 = vmatprep.mubr.msk.f32.mxu0 %vm8251_vm2, %v9610_v60  ;;  %7664 = vmatprep.subr.mxu1 %v9610_v60 }
 0x161   :  { %v1279_v34 = vpop.permute.xlu0 %1278  ;;  %7657 = vmatmul.mubr.msk.f32.vlgmr.msra.gmra.mrb[18].mxu1 %vm817_vm3, %v8530_v1  ;;  %7662 = vmatmul.mubr.msk.f32.vlgmr.msra.gmra.mrb[20].mxu0 %vm817_vm3, %v8528_v0  ;;  %v1202_v35 = vpop.permute.xlu1 %1201  ;;  %v8254_v0 = vmov 1966171168  }
 0x162   :  { %7669 = vmatprep.subr.mxu0 %v9610_v60  ;;  %7665 = vmatpush3.xpose.msk.msra.mxu1 %vm817_vm3, %v1202_v35  ;;  %v791_v1 = vunpack.c.l.s4 %v8254_v0 }
 0x163   :  { %7670 = vmatpush3.xpose.msk.msra.mxu0 %vm817_vm3, %v1279_v34  ;;  %7666 = vmatprep.mubr.msk.f32.mxu1 %vm8251_vm2, %v9610_v60 }
 0x164   :  { %7671 = vmatprep.mubr.msk.f32.mxu0 %vm8251_vm2, %v9610_v60  ;;  %7674 = vmatprep.subr.mxu1 %v9610_v60 }
 0x165   :  { %7667 = vmatmul.mubr.msk.f32.vlgmr.msra.gmra.mrb[20].mxu1 %vm817_vm3, %v8526_v63  ;;  %7679 = vmatprep.subr.mxu0 %v9610_v60  ;;  %v1356_v36 = vpop.permute.xlu1 %1355  ;;  %v1433_v37 = vpop.permute.xlu0 %1432 }
 0x166   :  { %7672 = vmatmul.mubr.msk.f32.vlgmr.msra.gmra.mrb[22].mxu0 %vm817_vm3, %v8540_v4  ;;  %7675 = vmatpush3.xpose.msk.msra.mxu1 %vm817_vm3, %v1356_v36 }
 0x167   :  { %7680 = vmatpush3.xpose.msk.msra.mxu0 %vm817_vm3, %v1433_v37  ;;  %7676 = vmatprep.mubr.msk.f32.mxu1 %vm8251_vm2, %v9610_v60 }
 0x168   :  { %7681 = vmatprep.mubr.msk.f32.mxu0 %vm8251_vm2, %v9610_v60  ;;  %7684 = vmatprep.subr.mxu1 %v9610_v60 }
 0x169   :  { %7677 = vmatmul.mubr.msk.f32.vlgmr.msra.gmra.mrb[22].mxu1 %vm817_vm3, %v8538_v3  ;;  %v1510_v38 = vpop.permute.xlu1 %1509  ;;  %7689 = vmatprep.subr.mxu0 %v9610_v60  ;;  %v1587_v39 = vpop.permute.xlu0 %1586  ;;  %v786_v3 = vld [vmem:[%s9604_s1] sm:$0xf] }
 0x16a   :  { %7682 = vmatmul.mubr.msk.f32.vlgmr.msra.gmra.mrb[24].mxu0 %vm817_vm3, %v8548_v6  ;;  %7685 = vmatpush3.xpose.msk.msra.mxu1 %vm817_vm3, %v1510_v38  ;;  %v787_v4 = vsub.f32 1.0, %v786_v3  ;;  %v794_v6 = vshrl.u32 %v793_v2, 7 }
 0x16b   :  { %7690 = vmatpush3.xpose.msk.msra.mxu0 %vm817_vm3, %v1587_v39  ;;  %7686 = vmatprep.mubr.msk.f32.mxu1 %vm8251_vm2, %v9610_v60 }
 0x16c   :  { %7691 = vmatprep.mubr.msk.f32.mxu0 %vm8251_vm2, %v9610_v60  ;;  %7694 = vmatprep.subr.mxu1 %v9610_v60 }
 0x16d   :  { %7687 = vmatmul.mubr.msk.f32.vlgmr.msra.gmra.mrb[24].mxu1 %vm817_vm3, %v8546_v5  ;;  %v1664_v40 = vpop.permute.xlu1 %1663  ;;  %7699 = vmatprep.subr.mxu0 %v9610_v60  ;;  %v1741_v41 = vpop.permute.xlu0 %1740  ;;  %v792_v5 = vunpack.c.0.s8 %v791_v1 }
 0x16e   :  { %7692 = vmatmul.mubr.msk.f32.vlgmr.msra.gmra.mrb[26].mxu0 %vm817_vm3, %v8560_v10  ;;  %7695 = vmatpush3.xpose.msk.msra.mxu1 %vm817_vm3, %v1664_v40 }
 0x16f   :  { %7700 = vmatpush3.xpose.msk.msra.mxu0 %vm817_vm3, %v1741_v41  ;;  %7696 = vmatprep.mubr.msk.f32.mxu1 %vm8251_vm2, %v9610_v60 }
 0x170   :  { %7701 = vmatprep.mubr.msk.f32.mxu0 %vm8251_vm2, %v9610_v60  ;;  %7704 = vmatprep.subr.mxu1 %v9610_v60 }
 0x171   :  { %7697 = vmatmul.mubr.msk.f32.vlgmr.msra.gmra.mrb[26].mxu1 %vm817_vm3, %v8556_v8  ;;  %v1818_v42 = vpop.permute.xlu1 %1817  ;;  %7709 = vmatprep.subr.mxu0 %v9610_v60  ;;  %v1895_v43 = vpop.permute.xlu0 %1894  ;;  %v8901_v8 = vsub.s32 %v792_v5, %v794_v6 }
 0x172   :  { %7702 = vmatmul.mubr.msk.f32.vlgmr.msra.gmra.mrb[28].mxu0 %vm817_vm3, %v8558_v9  ;;  %7705 = vmatpush3.xpose.msk.msra.mxu1 %vm817_vm3, %v1818_v42 }
 0x173   :  { %7710 = vmatpush3.xpose.msk.msra.mxu0 %vm817_vm3, %v1895_v43  ;;  %7706 = vmatprep.mubr.msk.f32.mxu1 %vm8251_vm2, %v9610_v60  ;;  %9616 = vst [vmem:[#allocation5_spill] sm:$0xff] %v8901_v8 }
 0x174   :  { %7711 = vmatprep.mubr.msk.f32.mxu0 %vm8251_vm2, %v9610_v60  ;;  %7714 = vmatprep.subr.mxu1 %v9610_v60 }
 0x175   :  { %7707 = vmatmul.mubr.msk.f32.vlgmr.msra.gmra.mrb[28].mxu1 %vm817_vm3, %v8554_v7  ;;  %v1972_v44 = vpop.permute.xlu1 %1971  ;;  %7719 = vmatprep.subr.mxu0 %v9610_v60  ;;  %v2049_v45 = vpop.permute.xlu0 %2048  ;;  %v788_v7 = vmul.f32 -1e+09, %v787_v4 }
 0x176   :  { %7712 = vmatmul.mubr.msk.f32.vlgmr.msra.gmra.mrb[30].mxu0 %vm817_vm3, %v8568_v12  ;;  %7715 = vmatpush3.xpose.msk.msra.mxu1 %vm817_vm3, %v1972_v44 }
 0x177   :  { %7720 = vmatpush3.xpose.msk.msra.mxu0 %vm817_vm3, %v2049_v45  ;;  %7716 = vmatprep.mubr.msk.f32.mxu1 %vm8251_vm2, %v9610_v60  ;;  %v796_v9 = vrot.slane %v788_v7, %v8901_v8 }
 0x178   :  { %7721 = vmatprep.mubr.msk.f32.mxu0 %vm8251_vm2, %v9610_v60  ;;  %7724 = vmatprep.subr.mxu1 %v9610_v60 }
 0x179   :  { %7717 = vmatmul.mubr.msk.f32.vlgmr.msra.gmra.mrb[30].mxu1 %vm817_vm3, %v8566_v11  ;;  %v2126_v46 = vpop.permute.xlu1 %2125  ;;  %7729 = vmatprep.subr.mxu0 %v9610_v60  ;;  %v2203_v47 = vpop.permute.xlu0 %2202  ;;  %v804_v10 = vrot.slane %v796_v9, %v8901_v8  ;;  %v8905_v11 = vsub.s32 0, %v794_v6  ;;  %v797_v12 = vcombine.high %v796_v9, %v796_v9 }
 0x17a   :  { %7722 = vmatmul.mubr.msk.f32.vlgmr.msra.gmra.mrb[32].mxu0 %vm817_vm3, %v8576_v14  ;;  %7725 = vmatpush3.xpose.msk.msra.mxu1 %vm817_vm3, %v2126_v46 }
 0x17b   :  { %7730 = vmatpush3.xpose.msk.msra.mxu0 %vm817_vm3, %v2203_v47  ;;  %7726 = vmatprep.mubr.msk.f32.mxu1 %vm8251_vm2, %v9610_v60  ;;  %9617 = vst [vmem:[#allocation6_spill] sm:$0xff] %v8905_v11  ;;  %v811_v14 = vrot.slane %v797_v12, %v8901_v8  ;;  %v812_v30 = vcombine.high %v804_v10, %v804_v10 }
 0x17c   :  { %7731 = vmatprep.mubr.msk.f32.mxu0 %vm8251_vm2, %v9610_v60  ;;  %7734 = vmatprep.subr.mxu1 %v9610_v60 }
 0x17d   :  { %7727 = vmatmul.mubr.msk.f32.vlgmr.msra.gmra.mrb[32].mxu1 %vm817_vm3, %v8570_v13  ;;  %v2280_v48 = vpop.permute.xlu1 %2279  ;;  %7739 = vmatprep.subr.mxu0 %v9610_v60  ;;  %v2357_v49 = vpop.permute.xlu0 %2356  ;;  %v8908_v13 = vrot.slane %v804_v10, %v8905_v11  ;;  %v8926_v41 = vrot.slane %v812_v30, %v8905_v11 }
 0x17e   :  { %7732 = vmatmul.mubr.msk.f32.vlgmr.msra.gmra.mrb[34].mxu0 %vm817_vm3, %v8584_v16  ;;  %7735 = vmatpush3.xpose.msk.msra.mxu1 %vm817_vm3, %v2280_v48 }
 0x17f   :  { %7740 = vmatpush3.xpose.msk.msra.mxu0 %vm817_vm3, %v2357_v49  ;;  %7736 = vmatprep.mubr.msk.f32.mxu1 %vm8251_vm2, %v9610_v60 }
 0x180   :  { %7741 = vmatprep.mubr.msk.f32.mxu0 %vm8251_vm2, %v9610_v60  ;;  %7744 = vmatprep.subr.mxu1 %v9610_v60 }
 0x181   :  { %7737 = vmatmul.mubr.msk.f32.vlgmr.msra.gmra.mrb[34].mxu1 %vm817_vm3, %v8578_v15  ;;  %v2434_v50 = vpop.permute.xlu1 %2433  ;;  %7749 = vmatprep.subr.mxu0 %v9610_v60  ;;  %v2511_v51 = vpop.permute.xlu0 %2510 }
 0x182   :  { %7742 = vmatmul.mubr.msk.f32.vlgmr.msra.gmra.mrb[36].mxu0 %vm817_vm3, %v8588_v18  ;;  %7745 = vmatpush3.xpose.msk.msra.mxu1 %vm817_vm3, %v2434_v50 }
 0x183   :  { %7750 = vmatpush3.xpose.msk.msra.mxu0 %vm817_vm3, %v2511_v51  ;;  %7746 = vmatprep.mubr.msk.f32.mxu1 %vm8251_vm2, %v9610_v60 }
 0x184   :  { %7751 = vmatprep.mubr.msk.f32.mxu0 %vm8251_vm2, %v9610_v60  ;;  %7754 = vmatprep.subr.mxu1 %v9610_v60 }
 0x185   :  { %7747 = vmatmul.mubr.msk.f32.vlgmr.msra.gmra.mrb[36].mxu1 %vm817_vm3, %v8586_v17  ;;  %v2588_v52 = vpop.permute.xlu1 %2587  ;;  %7759 = vmatprep.subr.mxu0 %v9610_v60  ;;  %v2665_v53 = vpop.permute.xlu0 %2664 }
 0x186   :  { %7752 = vmatmul.mubr.msk.f32.vlgmr.msra.gmra.mrb[38].mxu0 %vm817_vm3, %v8596_v20  ;;  %7755 = vmatpush3.xpose.msk.msra.mxu1 %vm817_vm3, %v2588_v52  ;;  %v813_v20 = vcombine.high %v811_v14, %v811_v14 }
 0x187   :  { %7760 = vmatpush3.xpose.msk.msra.mxu0 %vm817_vm3, %v2665_v53  ;;  %7756 = vmatprep.mubr.msk.f32.mxu1 %vm8251_vm2, %v9610_v60 }
 0x188   :  { %7761 = vmatprep.mubr.msk.f32.mxu0 %vm8251_vm2, %v9610_v60  ;;  %7764 = vmatprep.subr.mxu1 %v9610_v60  ;;  %v8923_v33 = vrot.slane %v813_v20, %v8905_v11 }
 0x189   :  { %7757 = vmatmul.mubr.msk.f32.vlgmr.msra.gmra.mrb[38].mxu1 %vm817_vm3, %v8594_v19  ;;  %v2742_v54 = vpop.permute.xlu1 %2741  ;;  %7769 = vmatprep.subr.mxu0 %v9610_v60  ;;  %v2819_v55 = vpop.permute.xlu0 %2818  ;;  %v8915_v19 = vrot.slane %v811_v14, %v8905_v11 }
 0x18a   :  { %7762 = vmatmul.mubr.msk.f32.vlgmr.msra.gmra.mrb[40].mxu0 %vm817_vm3, %v8604_v22  ;;  %7765 = vmatpush3.xpose.msk.msra.mxu1 %vm817_vm3, %v2742_v54 }
 0x18b   :  { %7770 = vmatpush3.xpose.msk.msra.mxu0 %vm817_vm3, %v2819_v55  ;;  %7766 = vmatprep.mubr.msk.f32.mxu1 %vm8251_vm2, %v9610_v60 }
 0x18c   :  { %7771 = vmatprep.mubr.msk.f32.mxu0 %vm8251_vm2, %v9610_v60  ;;  %7774 = vmatprep.subr.mxu1 %v9610_v60 }
 0x18d   :  { %7767 = vmatmul.mubr.msk.f32.vlgmr.msra.gmra.mrb[40].mxu1 %vm817_vm3, %v8598_v21  ;;  %v2896_v56 = vpop.permute.xlu1 %2895  ;;  %7779 = vmatprep.subr.mxu0 %v9610_v60  ;;  %v2973_v57 = vpop.permute.xlu0 %2972 }
 0x18e   :  { %7772 = vmatmul.mubr.msk.f32.vlgmr.msra.gmra.mrb[42].mxu0 %vm817_vm3, %v8612_v24  ;;  %7775 = vmatpush3.xpose.msk.msra.mxu1 %vm817_vm3, %v2896_v56 }
 0x18f   :  { %7780 = vmatpush3.xpose.msk.msra.mxu0 %vm817_vm3, %v2973_v57  ;;  %7776 = vmatprep.mubr.msk.f32.mxu1 %vm8251_vm2, %v9610_v60 }
 0x190   :  { %7781 = vmatprep.mubr.msk.f32.mxu0 %vm8251_vm2, %v9610_v60  ;;  %7784 = vmatprep.subr.mxu1 %v9610_v60 }
 0x191   :  { %7777 = vmatmul.mubr.msk.f32.vlgmr.msra.gmra.mrb[42].mxu1 %vm817_vm3, %v8606_v23  ;;  %v3050_v58 = vpop.permute.xlu1 %3049  ;;  %7789 = vmatprep.subr.mxu0 %v9610_v60  ;;  %v3127_v59 = vpop.permute.xlu0 %3126 }
 0x192   :  { %7782 = vmatmul.mubr.msk.f32.vlgmr.msra.gmra.mrb[44].mxu0 %vm817_vm3, %v8616_v26  ;;  %7785 = vmatpush3.xpose.msk.msra.mxu1 %vm817_vm3, %v3050_v58 }
 0x193   :  { %7790 = vmatpush3.xpose.msk.msra.mxu0 %vm817_vm3, %v3127_v59  ;;  %7786 = vmatprep.mubr.msk.f32.mxu1 %vm8251_vm2, %v9610_v60 }
 0x194   :  { %7791 = vmatprep.mubr.msk.f32.mxu0 %vm8251_vm2, %v9610_v60  ;;  %7794 = vmatprep.subr.mxu1 %v9610_v60 }
 0x195   :  { %7787 = vmatmul.mubr.msk.f32.vlgmr.msra.gmra.mrb[44].mxu1 %vm817_vm3, %v8614_v25  ;;  %v3204_v61 = vpop.permute.xlu1 %3203  ;;  %7799 = vmatprep.subr.mxu0 %v9610_v60  ;;  %v3792_v62 = vpop.permute.xlu0 %3791 }
 0x196   :  { %7792 = vmatmul.mubr.msk.f32.vlgmr.msra.gmra.mrb[46].mxu0 %vm817_vm3, %v8624_v28  ;;  %7795 = vmatpush3.xpose.msk.msra.mxu1 %vm817_vm3, %v3204_v61 }
 0x197   :  { %7796 = vmatprep.mubr.msk.f32.mxu1 %vm8251_vm2, %v9610_v60  ;;  %7804 = vmatprep.subr.mxu1 %v9610_v60 }
 0x198   :  { %7801 = vmatprep.mubr.msk.f32.mxu0 %vm8251_vm2, %v9610_v60 }
 0x199   :  { %7797 = vmatmul.mubr.msk.f32.vlgmr.msra.gmra.mrb[46].mxu1 %vm817_vm3, %v8622_v27  ;;  %v3716_v63 = vpop.permute.xlu1 %3715 }
 0x19a   :  { %7800 = vmatpush3.msra.mxu0 %v3716_v63  ;;  %7805 = vmatpush3.msra.mxu1 %v3792_v62 }
 0x19b   :  { %7809 = vmatprep.subr.mxu0 %v9610_v60  ;;  %7806 = vmatprep.mubr.msk.f32.mxu1 %vm8251_vm2, %v9610_v60 }
 0x19c   :  { %7814 = vmatprep.subr.mxu1 %v9610_v60 }
 0x22c   :  { %v888_v15 = vpop.f32.mrb[16].mxu0 }
 0x22d   :  { %v3279_v16 = vmul.f32 0.35355338, %v888_v15  ;;  %v7643_v17 = vpop.f32.mrb[17].mxu0 }
 0x22f   :  { %v8912_v18 = vadd.f32 %v8908_v13, %v3279_v16 }
 0x230   :  { %v965_v21 = vpop.f32.mrb[16].mxu1  ;;  %v1042_v22 = vpop.f32.mrb[18].mxu0 }
 0x231   :  { %v3280_v23 = vmul.f32 0.35355338, %v965_v21  ;;  %v7648_v24 = vpop.f32.mrb[17].mxu1  ;;  %v7653_v29 = vpop.f32.mrb[19].mxu0  ;;  %v3363_v31 = vsel %vm817_vm3, %v8912_v18, -inf }
 0x232   :  { %3364 = vmax.xlane.f32.xlu0 %v3363_v31  ;;  %v3281_v34 = vmul.f32 0.35355338, %v1042_v22 }
 0x233   :  { %v8920_v32 = vadd.f32 %v8915_v19, %v3280_v23 }
 0x234   :  { %v1119_v35 = vpop.f32.mrb[18].mxu1  ;;  %v1196_v36 = vpop.f32.mrb[20].mxu0  ;;  %v8941_v51 = vadd.f32 %v8926_v41, %v3281_v34 }
 0x235   :  { %v3282_v37 = vmul.f32 0.35355338, %v1119_v35  ;;  %v3283_v38 = vmul.f32 0.35355338, %v1196_v36  ;;  %v7658_v39 = vpop.f32.mrb[19].mxu1  ;;  %v7663_v40 = vpop.f32.mrb[21].mxu0 }
 0x236   :  { %v3366_v42 = vsel %vm817_vm3, %v8920_v32, -inf  ;;  %v3369_v59 = vsel %vm817_vm3, %v8941_v51, -inf }
 0x237   :  { %3367 = vmax.xlane.f32.xlu1 %v3366_v42  ;;  %v8931_v43 = vadd.f32 %v8923_v33, %v3282_v37  ;;  %v8934_v44 = vadd.f32 %v8908_v13, %v3283_v38 }
 0x238   :  { %v1273_v45 = vpop.f32.mrb[20].mxu1 }
 0x239   :  { %v3284_v46 = vmul.f32 0.35355338, %v1273_v45  ;;  %v1350_v47 = vpop.f32.mrb[22].mxu0  ;;  %v7668_v48 = vpop.f32.mrb[21].mxu1  ;;  %v3372_v49 = vsel %vm817_vm3, %v8931_v43, -inf  ;;  %v3375_v50 = vsel %vm817_vm3, %v8934_v44, -inf }
 0x23a   :  { %v3285_v52 = vmul.f32 0.35355338, %v1350_v47  ;;  %v7673_v53 = vpop.f32.mrb[23].mxu0  ;;  %3373 = vmax.xlane.f32.xlu0 %v3372_v49 }
 0x23b   :  { %3376 = vmax.xlane.f32.xlu1 %v3375_v50  ;;  %v8949_v61 = vadd.f32 %v8915_v19, %v3284_v46 }
 0x23c   :  { %v1427_v54 = vpop.f32.mrb[22].mxu1  ;;  %v8944_v55 = vadd.f32 %v8926_v41, %v3285_v52 }
 0x23d   :  { %v3286_v56 = vmul.f32 0.35355338, %v1427_v54  ;;  %v1504_v57 = vpop.f32.mrb[24].mxu0  ;;  %v7678_v58 = vpop.f32.mrb[23].mxu1  ;;  %v3378_v6 = vsel %vm817_vm3, %v8949_v61, -inf }
 0x23e   :  { %v3287_v62 = vmul.f32 0.35355338, %v1504_v57  ;;  %v7683_v63 = vpop.f32.mrb[25].mxu0  ;;  %3370 = vmax.xlane.f32.xlu0 %v3369_v59  ;;  %v3381_v0 = vsel %vm817_vm3, %v8944_v55, -inf }
 0x23f   :  { %3382 = vmax.xlane.f32.xlu1 %v3381_v0  ;;  %v8959_v7 = vadd.f32 %v8923_v33, %v3286_v56 }
 0x240   :  { %v1581_v1 = vpop.f32.mrb[24].mxu1  ;;  %v8954_v2 = vadd.f32 %v8908_v13, %v3287_v62 }
 0x241   :  { %v3288_v3 = vmul.f32 0.35355338, %v1581_v1  ;;  %v1658_v4 = vpop.f32.mrb[26].mxu0  ;;  %v7688_v5 = vpop.f32.mrb[25].mxu1  ;;  %v3384_v21 = vsel %vm817_vm3, %v8959_v7, -inf }
 0x242   :  { %v3289_v9 = vmul.f32 0.35355338, %v1658_v4  ;;  %v7693_v10 = vpop.f32.mrb[27].mxu0  ;;  %3379 = vmax.xlane.f32.xlu0 %v3378_v6  ;;  %v3387_v12 = vsel %vm817_vm3, %v8954_v2, -inf }
 0x243   :  { %3388 = vmax.xlane.f32.xlu1 %v3387_v12  ;;  %v8969_v22 = vadd.f32 %v8915_v19, %v3288_v3 }
 0x244   :  { %v1735_v14 = vpop.f32.mrb[26].mxu1  ;;  %v8964_v15 = vadd.f32 %v8926_v41, %v3289_v9 }
 0x245   :  { %v3290_v16 = vmul.f32 0.35355338, %v1735_v14  ;;  %v1812_v17 = vpop.f32.mrb[28].mxu0  ;;  %v7698_v20 = vpop.f32.mrb[27].mxu1  ;;  %v3390_v37 = vsel %vm817_vm3, %v8969_v22, -inf }
 0x246   :  { %v3291_v23 = vmul.f32 0.35355338, %v1812_v17  ;;  %v7703_v24 = vpop.f32.mrb[29].mxu0  ;;  %3385 = vmax.xlane.f32.xlu0 %v3384_v21  ;;  %v3393_v29 = vsel %vm817_vm3, %v8964_v15, -inf }
 0x247   :  { %3394 = vmax.xlane.f32.xlu1 %v3393_v29  ;;  %v8979_v38 = vadd.f32 %v8923_v33, %v3290_v16 }
 0x248   :  { %v1889_v30 = vpop.f32.mrb[28].mxu1  ;;  %v8974_v31 = vadd.f32 %v8908_v13, %v3291_v23 }
 0x249   :  { %v3292_v34 = vmul.f32 0.35355338, %v1889_v30  ;;  %v1966_v35 = vpop.f32.mrb[30].mxu0  ;;  %v7708_v36 = vpop.f32.mrb[29].mxu1  ;;  %v3396_v50 = vsel %vm817_vm3, %v8979_v38, -inf }
 0x24a   :  { %v3293_v39 = vmul.f32 0.35355338, %v1966_v35  ;;  %v7713_v40 = vpop.f32.mrb[31].mxu0  ;;  %3391 = vmax.xlane.f32.xlu0 %v3390_v37  ;;  %v3399_v42 = vsel %vm817_vm3, %v8974_v31, -inf }
 0x24b   :  { %3400 = vmax.xlane.f32.xlu1 %v3399_v42  ;;  %v8989_v52 = vadd.f32 %v8915_v19, %v3292_v34 }
 0x24c   :  { %v2043_v45 = vpop.f32.mrb[30].mxu1  ;;  %v8984_v46 = vadd.f32 %v8926_v41, %v3293_v39 }
 0x24d   :  { %v3294_v47 = vmul.f32 0.35355338, %v2043_v45  ;;  %v2120_v48 = vpop.f32.mrb[32].mxu0  ;;  %v7718_v49 = vpop.f32.mrb[31].mxu1  ;;  %v3402_v0 = vsel %vm817_vm3, %v8989_v52, -inf }
 0x24e   :  { %v3295_v53 = vmul.f32 0.35355338, %v2120_v48  ;;  %v7723_v54 = vpop.f32.mrb[33].mxu0  ;;  %3397 = vmax.xlane.f32.xlu0 %v3396_v50  ;;  %v3405_v56 = vsel %vm817_vm3, %v8984_v46, -inf }
 0x24f   :  { %3406 = vmax.xlane.f32.xlu1 %v3405_v56  ;;  %v8999_v1 = vadd.f32 %v8923_v33, %v3294_v47 }
 0x250   :  { %v2197_v57 = vpop.f32.mrb[32].mxu1  ;;  %v8994_v58 = vadd.f32 %v8908_v13, %v3295_v53 }
 0x251   :  { %v3296_v59 = vmul.f32 0.35355338, %v2197_v57  ;;  %v2274_v62 = vpop.f32.mrb[34].mxu0  ;;  %v7728_v63 = vpop.f32.mrb[33].mxu1  ;;  %v3408_v16 = vsel %vm817_vm3, %v8999_v1, -inf }
 0x252   :  { %v3297_v3 = vmul.f32 0.35355338, %v2274_v62  ;;  %v7733_v4 = vpop.f32.mrb[35].mxu0  ;;  %3403 = vmax.xlane.f32.xlu0 %v3402_v0  ;;  %v3411_v5 = vsel %vm817_vm3, %v8994_v58, -inf }
 0x253   :  { %3412 = vmax.xlane.f32.xlu1 %v3411_v5  ;;  %v9009_v17 = vadd.f32 %v8915_v19, %v3296_v59 }
 0x254   :  { %v2351_v6 = vpop.f32.mrb[34].mxu1  ;;  %v9004_v9 = vadd.f32 %v8926_v41, %v3297_v3 }
 0x255   :  { %v3298_v10 = vmul.f32 0.35355338, %v2351_v6  ;;  %v2428_v12 = vpop.f32.mrb[36].mxu0  ;;  %v7738_v14 = vpop.f32.mrb[35].mxu1  ;;  %v3414_v36 = vsel %vm817_vm3, %v9009_v17, -inf }
 0x256   :  { %v3299_v20 = vmul.f32 0.35355338, %v2428_v12  ;;  %v7743_v21 = vpop.f32.mrb[37].mxu0  ;;  %3409 = vmax.xlane.f32.xlu0 %v3408_v16  ;;  %v3417_v23 = vsel %vm817_vm3, %v9004_v9, -inf }
 0x257   :  { %3418 = vmax.xlane.f32.xlu1 %v3417_v23  ;;  %v9019_v37 = vadd.f32 %v8923_v33, %v3298_v10 }
 0x258   :  { %v2505_v24 = vpop.f32.mrb[36].mxu1  ;;  %v9014_v29 = vadd.f32 %v8908_v13, %v3299_v20 }
 0x259   :  { %v3300_v30 = vmul.f32 0.35355338, %v2505_v24  ;;  %v2582_v34 = vpop.f32.mrb[38].mxu0  ;;  %v7748_v35 = vpop.f32.mrb[37].mxu1  ;;  %v3420_v53 = vsel %vm817_vm3, %v9019_v37, -inf }
 0x25a   :  { %v3301_v39 = vmul.f32 0.35355338, %v2582_v34  ;;  %v7753_v40 = vpop.f32.mrb[39].mxu0  ;;  %3415 = vmax.xlane.f32.xlu0 %v3414_v36  ;;  %v3423_v42 = vsel %vm817_vm3, %v9014_v29, -inf }
 0x25b   :  { %3424 = vmax.xlane.f32.xlu1 %v3423_v42  ;;  %v9029_v54 = vadd.f32 %v8915_v19, %v3300_v30 }
 0x25c   :  { %v2659_v45 = vpop.f32.mrb[38].mxu1  ;;  %v9024_v47 = vadd.f32 %v8926_v41, %v3301_v39 }
 0x25d   :  { %v3302_v48 = vmul.f32 0.35355338, %v2659_v45  ;;  %v2736_v49 = vpop.f32.mrb[40].mxu0  ;;  %v7758_v50 = vpop.f32.mrb[39].mxu1  ;;  %v3426_v5 = vsel %vm817_vm3, %v9029_v54, -inf }
 0x25e   :  { %v3303_v56 = vmul.f32 0.35355338, %v2736_v49  ;;  %v7763_v57 = vpop.f32.mrb[41].mxu0  ;;  %3421 = vmax.xlane.f32.xlu0 %v3420_v53  ;;  %v3429_v59 = vsel %vm817_vm3, %v9024_v47, -inf }
 0x25f   :  { %3430 = vmax.xlane.f32.xlu1 %v3429_v59  ;;  %v9039_v6 = vadd.f32 %v8923_v33, %v3302_v48 }
 0x260   :  { %v2813_v62 = vpop.f32.mrb[40].mxu1  ;;  %v9034_v63 = vadd.f32 %v8908_v13, %v3303_v56 }
 0x261   :  { %v3304_v0 = vmul.f32 0.35355338, %v2813_v62  ;;  %v2890_v3 = vpop.f32.mrb[42].mxu0  ;;  %v7768_v4 = vpop.f32.mrb[41].mxu1  ;;  %v3432_v30 = vsel %vm817_vm3, %v9039_v6, -inf }
 0x262   :  { %v3305_v10 = vmul.f32 0.35355338, %v2890_v3  ;;  %v7773_v12 = vpop.f32.mrb[43].mxu0  ;;  %3427 = vmax.xlane.f32.xlu0 %v3426_v5  ;;  %v3435_v14 = vsel %vm817_vm3, %v9034_v63, -inf }
 0x263   :  { %3436 = vmax.xlane.f32.xlu1 %v3435_v14  ;;  %v9049_v34 = vadd.f32 %v8915_v19, %v3304_v0 }
 0x264   :  { %v2967_v16 = vpop.f32.mrb[42].mxu1  ;;  %v9044_v20 = vadd.f32 %v8926_v41, %v3305_v10 }
 0x265   :  { %v3306_v21 = vmul.f32 0.35355338, %v2967_v16  ;;  %v3044_v23 = vpop.f32.mrb[44].mxu0  ;;  %v7778_v24 = vpop.f32.mrb[43].mxu1  ;;  %v3438_v50 = vsel %vm817_vm3, %v9049_v34, -inf }
 0x266   :  { %v3307_v35 = vmul.f32 0.35355338, %v3044_v23  ;;  %v7783_v36 = vpop.f32.mrb[45].mxu0  ;;  %3433 = vmax.xlane.f32.xlu0 %v3432_v30  ;;  %v3441_v39 = vsel %vm817_vm3, %v9044_v20, -inf }
 0x267   :  { %3442 = vmax.xlane.f32.xlu1 %v3441_v39  ;;  %v9059_v53 = vadd.f32 %v8923_v33, %v3306_v21  ;;  %v9084_v21 = vpop.permute.xlu0 %3943 }
 0x268   :  { %v3121_v40 = vpop.f32.mrb[44].mxu1  ;;  %v9054_v42 = vadd.f32 %v8908_v13, %v3307_v35 }
 0x269   :  { %v3308_v45 = vmul.f32 0.35355338, %v3121_v40  ;;  %v3198_v48 = vpop.f32.mrb[46].mxu0  ;;  %v7788_v49 = vpop.f32.mrb[45].mxu1  ;;  %v3444_v4 = vsel %vm817_vm3, %v9059_v53, -inf }
 0x26a   :  { %v3309_v56 = vmul.f32 0.35355338, %v3198_v48  ;;  %v7793_v57 = vpop.f32.mrb[47].mxu0  ;;  %3439 = vmax.xlane.f32.xlu0 %v3438_v50  ;;  %v3447_v59 = vsel %vm817_vm3, %v9054_v42, -inf }
 0x26b   :  { %3448 = vmax.xlane.f32.xlu1 %v3447_v59  ;;  %v9069_v5 = vadd.f32 %v8915_v19, %v3308_v45  ;;  %v9088_v24 = vpop.permute.xlu0 %4095 }
 0x26c   :  { %v3275_v62 = vpop.f32.mrb[46].mxu1  ;;  %v9064_v13 = vadd.f32 %v8926_v41, %v3309_v56  ;;  %v9078_v41 = vpop.permute.xlu1 %3867 }
 0x26d   :  { %v3310_v0 = vmul.f32 0.35355338, %v3275_v62  ;;  %v7798_v3 = vpop.f32.mrb[47].mxu1  ;;  %v3450_v12 = vsel %vm817_vm3, %v9069_v5, -inf }
 0x26e   :  { %3445 = vmax.xlane.f32.xlu0 %v3444_v4  ;;  %v3453_v10 = vsel %vm817_vm3, %v9064_v13, -inf }
 0x26f   :  { %3454 = vmax.xlane.f32.xlu1 %v3453_v10  ;;  %v9076_v14 = vadd.f32 %v8923_v33, %v3310_v0  ;;  %v9094_v30 = vpop.permute.xlu0 %4247 }
 0x270   :  { %v9082_v19 = vpop.permute.xlu1 %4019 }
 0x271   :  { %v3456_v16 = vsel %vm817_vm3, %v9076_v14, -inf }
 0x272   :  { %3451 = vmax.xlane.f32.xlu0 %v3450_v12 }
 0x273   :  { %v9098_v36 = vpop.permute.xlu0 %4399 }
 0x274   :  { %v9086_v23 = vpop.permute.xlu1 %4171 }
 0x276   :  { %3457 = vmax.xlane.f32.xlu0 %v3456_v16 }
 0x277   :  { %v9104_v40 = vpop.permute.xlu0 %4551 }
 0x278   :  { %v9092_v33 = vpop.permute.xlu1 %4323 }
 0x27b   :  { %v9108_v48 = vpop.permute.xlu0 %4703 }
 0x27c   :  { %v9096_v35 = vpop.permute.xlu1 %4475 }
 0x27f   :  { %v9112_v49 = vpop.permute.xlu0 %4855 }
 0x280   :  { %5919 = vrot.lane.b32.xlu1 %v8614_v25, %s8253_s11  ;;  %v9102_v39 = vpop.permute.xlu1 %4627 }
 0x283   :  { %v9116_v56 = vpop.permute.xlu0 %5007 }
 0x284   :  { %v9106_v45 = vpop.permute.xlu1 %4779 }
 0x287   :  { %v9120_v59 = vpop.permute.xlu0 %5159 }
 0x288   :  { %v9110_v25 = vpop.permute.xlu1 %4931  ;;  %9620 = vst [vmem:[#allocation9_spill] sm:$0xff] %v9120_v59 }
 0x28b   :  { %v9124_v62 = vpop.permute.xlu0 %5387 }
 0x28c   :  { %5843 = vrot.lane.b32.xlu0 %v8616_v26, %s8253_s11  ;;  %v9114_v50 = vpop.permute.xlu1 %5083  ;;  %9622 = vst [vmem:[#allocation11_spill] sm:$0xff] %v9124_v62 }
 0x28d   :  { %9618 = vst [vmem:[#allocation7_spill] sm:$0xff] %v9114_v50 }
 0x28f   :  { %v9128_v3 = vpop.permute.xlu0 %5539 }
 0x290   :  { %v9118_v57 = vpop.permute.xlu1 %5235  ;;  %9624 = vst [vmem:[#allocation13_spill] sm:$0xff] %v9128_v3 }
 0x291   :  { %9619 = vst [vmem:[#allocation8_spill] sm:$0xff] %v9118_v57 }
 0x293   :  { %v9132_v10 = vpop.permute.xlu0 %5691 }
 0x294   :  { %v9122_v26 = vpop.permute.xlu1 %5311  ;;  %9626 = vst [vmem:[#allocation15_spill] sm:$0xff] %v9132_v10 }
 0x295   :  { %9621 = vst [vmem:[#allocation10_spill] sm:$0xff] %v9122_v26 }
 0x298   :  { %v9126_v0 = vpop.permute.xlu1 %5463 }
 0x299   :  { %9623 = vst [vmem:[#allocation12_spill] sm:$0xff] %v9126_v0 }
 0x29c   :  { %v9130_v4 = vpop.permute.xlu1 %5615 }
 0x29d   :  { %9625 = vst [vmem:[#allocation14_spill] sm:$0xff] %v9130_v4 }
 0x2a0   :  { %v9134_v12 = vpop.permute.xlu1 %5767 }
 0x2a1   :  { %9627 = vst [vmem:[#allocation16_spill] sm:$0xff] %v9134_v12 }
 0x2bf   :  { %v3365_v16 = vpop.xlane.xlu0 %3364 }
 0x2c0   :  { %v3459_v60 = vsub.f32 %v8912_v18, %v3365_v16 }
 0x2c2   :  { %v3491_v11 = vmul.f32 1.442695, %v3459_v60 }
 0x2c4   :  { %v3368_v8 = vpop.xlane.xlu1 %3367  ;;  %8098 = vpow2.f32 %v3491_v11 }
 0x2c5   :  { %v3460_v57 = vsub.f32 %v8920_v32, %v3368_v8 }
 0x2c7   :  { %v3493_v26 = vmul.f32 1.442695, %v3460_v57  ;;  %v3374_v62 = vpop.xlane.xlu0 %3373 }
 0x2c8   :  { %v3462_v0 = vsub.f32 %v8931_v43, %v3374_v62  ;;  %v3377_v50 = vpop.xlane.xlu1 %3376 }
 0x2c9   :  { %8100 = vpow2.f32 %v3493_v26  ;;  %v3463_v4 = vsub.f32 %v8934_v44, %v3377_v50 }
 0x2ca   :  { %v3497_v3 = vmul.f32 1.442695, %v3462_v0 }
 0x2cb   :  { %v3371_v10 = vpop.xlane.xlu0 %3370  ;;  %v3499_v18 = vmul.f32 1.442695, %v3463_v4 }
 0x2cc   :  { %8102 = vpow2.f32 %v3497_v3  ;;  %v3461_v12 = vsub.f32 %v8941_v51, %v3371_v10  ;;  %v3383_v59 = vpop.xlane.xlu1 %3382 }
 0x2cd   :  { %v3465_v11 = vsub.f32 %v8944_v55, %v3383_v59 }
 0x2ce   :  { %v3495_v60 = vmul.f32 1.442695, %v3461_v12  ;;  %v9142_v16 = vpop.eup %8098 }
 0x2cf   :  { %v3380_v8 = vpop.xlane.xlu0 %3379  ;;  %v3555_v57 = vsel %vm817_vm3, %v9142_v16, 0.0  ;;  %v3503_v44 = vmul.f32 1.442695, %v3465_v11 }
 0x2d0   :  { %8104 = vpow2.f32 %v3495_v60  ;;  %v3464_v32 = vsub.f32 %v8949_v61, %v3380_v8  ;;  %v3389_v43 = vpop.xlane.xlu1 %3388  ;;  %3556 = vadd.xlane.f32.xlu1 %v3555_v57 }
 0x2d1   :  { %8106 = vpow2.f32 %v3499_v18  ;;  %v3467_v51 = vsub.f32 %v8954_v2, %v3389_v43 }
 0x2d2   :  { %v3501_v50 = vmul.f32 1.442695, %v3464_v32 }
 0x2d3   :  { %v9148_v26 = vpop.eup %8100  ;;  %v3386_v62 = vpop.xlane.xlu0 %3385  ;;  %v3507_v3 = vmul.f32 1.442695, %v3467_v51 }
 0x2d4   :  { %8108 = vpow2.f32 %v3501_v50  ;;  %v3466_v55 = vsub.f32 %v8959_v7, %v3386_v62  ;;  %v3395_v59 = vpop.xlane.xlu1 %3394  ;;  %v3558_v61 = vsel %vm817_vm3, %v9148_v26, 0.0 }
 0x2d5   :  { %3559 = vadd.xlane.f32.xlu0 %v3558_v61  ;;  %8110 = vpow2.f32 %v3503_v44  ;;  %v3469_v10 = vsub.f32 %v8964_v15, %v3395_v59 }
 0x2d6   :  { %v9153_v0 = vpop.eup %8102  ;;  %v3505_v4 = vmul.f32 1.442695, %v3466_v55 }
 0x2d7   :  { %v3392_v12 = vpop.xlane.xlu0 %3391  ;;  %v3564_v2 = vsel %vm817_vm3, %v9153_v0, 0.0  ;;  %v3511_v11 = vmul.f32 1.442695, %v3469_v10 }
 0x2d8   :  { %8112 = vpow2.f32 %v3505_v4  ;;  %v3468_v18 = vsub.f32 %v8969_v22, %v3392_v12  ;;  %v3401_v7 = vpop.xlane.xlu1 %3400 }
 0x2d9   :  { %3565 = vadd.xlane.f32.xlu0 %v3564_v2  ;;  %8114 = vpow2.f32 %v3507_v3  ;;  %v3471_v32 = vsub.f32 %v8974_v31, %v3401_v7 }
 0x2da   :  { %v9159_v60 = vpop.eup %8104  ;;  %v3509_v8 = vmul.f32 1.442695, %v3468_v18 }
 0x2db   :  { %v3398_v43 = vpop.xlane.xlu0 %3397  ;;  %v3561_v15 = vsel %vm817_vm3, %v9159_v60, 0.0  ;;  %v9164_v57 = vpop.eup %8106  ;;  %v3515_v51 = vmul.f32 1.442695, %v3471_v32 }
 0x2dc   :  { %8116 = vpow2.f32 %v3509_v8  ;;  %v3470_v44 = vsub.f32 %v8979_v38, %v3398_v43  ;;  %v3407_v50 = vpop.xlane.xlu1 %3406  ;;  %3562 = vadd.xlane.f32.xlu1 %v3561_v15  ;;  %v3567_v61 = vsel %vm817_vm3, %v9164_v57, 0.0 }
 0x2dd   :  { %8118 = vpow2.f32 %v3511_v11  ;;  %v3473_v55 = vsub.f32 %v8984_v46, %v3407_v50 }
 0x2de   :  { %v9167_v22 = vpop.eup %8108  ;;  %v3513_v62 = vmul.f32 1.442695, %v3470_v44 }
 0x2df   :  { %v3404_v59 = vpop.xlane.xlu0 %3403  ;;  %v3570_v31 = vsel %vm817_vm3, %v9167_v22, 0.0  ;;  %v9174_v3 = vpop.eup %8110  ;;  %v3519_v12 = vmul.f32 1.442695, %v3473_v55 }
 0x2e0   :  { %8120 = vpow2.f32 %v3513_v62  ;;  %v3472_v38 = vsub.f32 %v8989_v52, %v3404_v59  ;;  %v3413_v4 = vpop.xlane.xlu1 %3412  ;;  %3571 = vadd.xlane.f32.xlu0 %v3570_v31  ;;  %3568 = vadd.xlane.f32.xlu1 %v3567_v61  ;;  %v3573_v11 = vsel %vm817_vm3, %v9174_v3, 0.0 }
 0x2e1   :  { %8122 = vpow2.f32 %v3515_v51  ;;  %v3475_v2 = vsub.f32 %v8994_v58, %v3413_v4 }
 0x2e2   :  { %v9177_v10 = vpop.eup %8112  ;;  %v3517_v46 = vmul.f32 1.442695, %v3472_v38 }
 0x2e3   :  { %v3410_v18 = vpop.xlane.xlu0 %3409  ;;  %v3576_v7 = vsel %vm817_vm3, %v9177_v10, 0.0  ;;  %v9184_v8 = vpop.eup %8114  ;;  %v3523_v15 = vmul.f32 1.442695, %v3475_v2 }
 0x2e4   :  { %8124 = vpow2.f32 %v3517_v46  ;;  %v3474_v52 = vsub.f32 %v8999_v1, %v3410_v18  ;;  %v3419_v32 = vpop.xlane.xlu1 %3418  ;;  %3577 = vadd.xlane.f32.xlu0 %v3576_v7  ;;  %3574 = vadd.xlane.f32.xlu1 %v3573_v11  ;;  %v3579_v62 = vsel %vm817_vm3, %v9184_v8, 0.0 }
 0x2e5   :  { %8126 = vpow2.f32 %v3519_v12  ;;  %v3477_v44 = vsub.f32 %v9004_v9, %v3419_v32 }
 0x2e6   :  { %v9187_v43 = vpop.eup %8116  ;;  %v3521_v58 = vmul.f32 1.442695, %v3474_v52 }
 0x2e7   :  { %v3416_v50 = vpop.xlane.xlu0 %3415  ;;  %v3582_v51 = vsel %vm817_vm3, %v9187_v43, 0.0  ;;  %v9194_v55 = vpop.eup %8118  ;;  %v3527_v61 = vmul.f32 1.442695, %v3477_v44 }
 0x2e8   :  { %8128 = vpow2.f32 %v3521_v58  ;;  %v3476_v1 = vsub.f32 %v9009_v17, %v3416_v50  ;;  %v3425_v59 = vpop.xlane.xlu1 %3424  ;;  %3583 = vadd.xlane.f32.xlu0 %v3582_v51  ;;  %3580 = vadd.xlane.f32.xlu1 %v3579_v62  ;;  %v3585_v46 = vsel %vm817_vm3, %v9194_v55, 0.0 }
 0x2e9   :  { %8130 = vpow2.f32 %v3523_v15  ;;  %v3479_v38 = vsub.f32 %v9014_v29, %v3425_v59 }
 0x2ea   :  { %v9197_v31 = vpop.eup %8120  ;;  %v3525_v9 = vmul.f32 1.442695, %v3476_v1 }
 0x2eb   :  { %v3422_v4 = vpop.xlane.xlu0 %3421  ;;  %v3588_v12 = vsel %vm817_vm3, %v9197_v31, 0.0  ;;  %v9204_v2 = vpop.eup %8122  ;;  %v3531_v11 = vmul.f32 1.442695, %v3479_v38 }
 0x2ec   :  { %8132 = vpow2.f32 %v3525_v9  ;;  %v3478_v17 = vsub.f32 %v9019_v37, %v3422_v4  ;;  %v3431_v18 = vpop.xlane.xlu1 %3430  ;;  %3589 = vadd.xlane.f32.xlu0 %v3588_v12  ;;  %3586 = vadd.xlane.f32.xlu1 %v3585_v46  ;;  %v3591_v58 = vsel %vm817_vm3, %v9204_v2, 0.0 }
 0x2ed   :  { %8134 = vpow2.f32 %v3527_v61  ;;  %v3481_v52 = vsub.f32 %v9024_v47, %v3431_v18 }
 0x2ee   :  { %v9207_v7 = vpop.eup %8124  ;;  %v3529_v29 = vmul.f32 1.442695, %v3478_v17 }
 0x2ef   :  { %v3428_v32 = vpop.xlane.xlu0 %3427  ;;  %v3594_v15 = vsel %vm817_vm3, %v9207_v7, 0.0  ;;  %v9214_v44 = vpop.eup %8126  ;;  %v3535_v62 = vmul.f32 1.442695, %v3481_v52 }
 0x2f0   :  { %8136 = vpow2.f32 %v3529_v29  ;;  %v3480_v37 = vsub.f32 %v9029_v54, %v3428_v32  ;;  %v3437_v50 = vpop.xlane.xlu1 %3436  ;;  %3595 = vadd.xlane.f32.xlu0 %v3594_v15  ;;  %3592 = vadd.xlane.f32.xlu1 %v3591_v58  ;;  %v3597_v9 = vsel %vm817_vm3, %v9214_v44, 0.0 }
 0x2f1   :  { %8138 = vpow2.f32 %v3531_v11  ;;  %v3483_v1 = vsub.f32 %v9034_v63, %v3437_v50 }
 0x2f2   :  { %v9217_v51 = vpop.eup %8128  ;;  %v3533_v47 = vmul.f32 1.442695, %v3480_v37 }
 0x2f3   :  { %v3434_v59 = vpop.xlane.xlu0 %3433  ;;  %v3600_v61 = vsel %vm817_vm3, %v9217_v51, 0.0  ;;  %v9224_v38 = vpop.eup %8130  ;;  %v3539_v46 = vmul.f32 1.442695, %v3483_v1 }
 0x2f4   :  { %8140 = vpow2.f32 %v3533_v47  ;;  %v3482_v54 = vsub.f32 %v9039_v6, %v3434_v59  ;;  %v3443_v4 = vpop.xlane.xlu1 %3442  ;;  %3601 = vadd.xlane.f32.xlu0 %v3600_v61  ;;  %3598 = vadd.xlane.f32.xlu1 %v3597_v9  ;;  %v3603_v29 = vsel %vm817_vm3, %v9224_v38, 0.0 }
 0x2f5   :  { %8142 = vpow2.f32 %v3535_v62  ;;  %v3485_v17 = vsub.f32 %v9044_v20, %v3443_v4 }
 0x2f6   :  { %v9227_v12 = vpop.eup %8132  ;;  %v3537_v63 = vmul.f32 1.442695, %v3482_v54 }
 0x2f7   :  { %v3440_v18 = vpop.xlane.xlu0 %3439  ;;  %v3606_v11 = vsel %vm817_vm3, %v9227_v12, 0.0  ;;  %v9234_v52 = vpop.eup %8134  ;;  %v3543_v58 = vmul.f32 1.442695, %v3485_v17 }
 0x2f8   :  { %8144 = vpow2.f32 %v3537_v63  ;;  %v3484_v6 = vsub.f32 %v9049_v34, %v3440_v18  ;;  %v3449_v32 = vpop.xlane.xlu1 %3448  ;;  %3607 = vadd.xlane.f32.xlu0 %v3606_v11  ;;  %3604 = vadd.xlane.f32.xlu1 %v3603_v29  ;;  %v3609_v47 = vsel %vm817_vm3, %v9234_v52, 0.0 }
 0x2f9   :  { %8146 = vpow2.f32 %v3539_v46  ;;  %v3487_v37 = vsub.f32 %v9054_v42, %v3449_v32 }
 0x2fa   :  { %v9237_v15 = vpop.eup %8136  ;;  %v3541_v20 = vmul.f32 1.442695, %v3484_v6 }
 0x2fb   :  { %v3446_v50 = vpop.xlane.xlu0 %3445  ;;  %v3612_v62 = vsel %vm817_vm3, %v9237_v15, 0.0  ;;  %v9244_v1 = vpop.eup %8138  ;;  %v3547_v9 = vmul.f32 1.442695, %v3487_v37 }
 0x2fc   :  { %8148 = vpow2.f32 %v3541_v20  ;;  %v3486_v34 = vsub.f32 %v9059_v53, %v3446_v50  ;;  %v3455_v59 = vpop.xlane.xlu1 %3454  ;;  %3613 = vadd.xlane.f32.xlu0 %v3612_v62  ;;  %3610 = vadd.xlane.f32.xlu1 %v3609_v47  ;;  %v3615_v63 = vsel %vm817_vm3, %v9244_v1, 0.0 }
 0x2fd   :  { %8150 = vpow2.f32 %v3543_v58  ;;  %v3489_v54 = vsub.f32 %v9064_v13, %v3455_v59 }
 0x2fe   :  { %v9247_v61 = vpop.eup %8140  ;;  %v3545_v42 = vmul.f32 1.442695, %v3486_v34 }
 0x2ff   :  { %v3452_v4 = vpop.xlane.xlu0 %3451  ;;  %v3618_v46 = vsel %vm817_vm3, %v9247_v61, 0.0  ;;  %v9254_v17 = vpop.eup %8142  ;;  %v3551_v11 = vmul.f32 1.442695, %v3489_v54 }
 0x300   :  { %8152 = vpow2.f32 %v3545_v42  ;;  %v3488_v53 = vsub.f32 %v9069_v5, %v3452_v4  ;;  %3619 = vadd.xlane.f32.xlu0 %v3618_v46  ;;  %3616 = vadd.xlane.f32.xlu1 %v3615_v63  ;;  %v3621_v32 = vsel %vm817_vm3, %v9254_v17, 0.0 }
 0x301   :  { %8154 = vpow2.f32 %v3547_v9 }
 0x302   :  { %v9257_v18 = vpop.eup %8144  ;;  %v3549_v29 = vmul.f32 1.442695, %v3488_v53 }
 0x303   :  { %v3458_v13 = vpop.xlane.xlu0 %3457  ;;  %v3624_v6 = vsel %vm817_vm3, %v9257_v18, 0.0  ;;  %v9263_v58 = vpop.eup %8146 }
 0x304   :  { %8156 = vpow2.f32 %v3549_v29  ;;  %v3490_v20 = vsub.f32 %v9076_v14, %v3458_v13  ;;  %3625 = vadd.xlane.f32.xlu0 %v3624_v6  ;;  %3622 = vadd.xlane.f32.xlu1 %v3621_v32  ;;  %v3627_v62 = vsel %vm817_vm3, %v9263_v58, 0.0  ;;  %v9300_v29 = vpop.permute.xlu1 %5919 }
 0x305   :  { %8158 = vpow2.f32 %v3551_v11 }
 0x306   :  { %v9266_v5 = vpop.eup %8148  ;;  %v3553_v37 = vmul.f32 1.442695, %v3490_v20 }
 0x307   :  { %v3630_v50 = vsel %vm817_vm3, %v9266_v5, 0.0  ;;  %v9272_v47 = vpop.eup %8150  ;;  %v9302_v13 = vpop.permute.xlu0 %5843 }
 0x308   :  { %8160 = vpow2.f32 %v3553_v37  ;;  %3631 = vadd.xlane.f32.xlu0 %v3630_v50  ;;  %3628 = vadd.xlane.f32.xlu1 %v3627_v62  ;;  %v3633_v59 = vsel %vm817_vm3, %v9272_v47, 0.0 }
 0x30a   :  { %v9274_v34 = vpop.eup %8152 }
 0x30b   :  { %v3636_v14 = vsel %vm817_vm3, %v9274_v34, 0.0  ;;  %v9280_v9 = vpop.eup %8154 }
 0x30c   :  { %3637 = vadd.xlane.f32.xlu0 %v3636_v14  ;;  %3634 = vadd.xlane.f32.xlu1 %v3633_v59  ;;  %v3639_v4 = vsel %vm817_vm3, %v9280_v9, 0.0  ;;  %v9628_v59 = vmov 0.0  }
 0x30e   :  { %v9282_v42 = vpop.eup %8156 }
 0x30f   :  { %v3642_v54 = vsel %vm817_vm3, %v9282_v42, 0.0  ;;  %v9288_v46 = vpop.eup %8158 }
 0x310   :  { %3643 = vadd.xlane.f32.xlu0 %v3642_v54  ;;  %3640 = vadd.xlane.f32.xlu1 %v3639_v4  ;;  %v3645_v11 = vsel %vm817_vm3, %v9288_v46, 0.0 }
 0x312   :  { %v9290_v63 = vpop.eup %8160 }
 0x313   :  { %v3648_v53 = vsel %vm817_vm3, %v9290_v63, 0.0 }
 0x314   :  { %3649 = vadd.xlane.f32.xlu0 %v3648_v53  ;;  %3646 = vadd.xlane.f32.xlu1 %v3645_v11 }
 0x325   :  { %6071 = vrot.lane.b32.xlu1 %v8622_v27, %s8253_s11 }
 0x32a   :  { %5995 = vrot.lane.b32.xlu0 %v8624_v28, %s8253_s11 }
 0x35d   :  { %v3557_v6 = vpop.xlane.xlu1 %3556 }
 0x35e   :  { %8162 = vrcp.f32 %v3557_v6 }
 0x362   :  { %v3560_v32 = vpop.xlane.xlu0 %3559 }
 0x363   :  { %8164 = vrcp.f32 %v3560_v32 }
 0x366   :  { %v3566_v20 = vpop.xlane.xlu0 %3565 }
 0x367   :  { %8166 = vrcp.f32 %v3566_v20 }
 0x368   :  { %v8163_v37 = vpop.eup %8162 }
 0x369   :  { %v3563_v50 = vpop.xlane.xlu1 %3562  ;;  %v3652_v62 = vmul.f32 %v8163_v37, %v9142_v16 }
 0x36a   :  { %8168 = vrcp.f32 %v3563_v50 }
 0x36b   :  { %7802 = vmatmul.mubr.msk.f32.vlgmr.msra.gmra.mrb[48].mxu0 %vm817_vm3, %v3652_v62 }
 0x36c   :  { %7810 = vmatpush3.msra.mxu0 %v9078_v41  ;;  %7811 = vmatprep.mubr.msk.f32.mxu0 %vm8251_vm2, %v9628_v59 }
 0x36d   :  { %v8165_v27 = vpop.eup %8164  ;;  %v3572_v28 = vpop.xlane.xlu0 %3571  ;;  %7819 = vmatprep.subr.mxu0 %v9628_v59 }
 0x36e   :  { %v3569_v14 = vpop.xlane.xlu1 %3568  ;;  %v3654_v54 = vmul.f32 %v8165_v27, %v9148_v26  ;;  %8170 = vrcp.f32 %v3572_v28 }
 0x36f   :  { %8172 = vrcp.f32 %v3569_v14 }
 0x370   :  { %7807 = vmatmul.mubr.msk.f32.vlgmr.msra.gmra.mrb[48].mxu1 %vm817_vm3, %v3654_v54 }
 0x371   :  { %v8167_v16 = vpop.eup %8166  ;;  %7815 = vmatpush3.msra.mxu1 %v9084_v21  ;;  %v3578_v4 = vpop.xlane.xlu0 %3577  ;;  %7816 = vmatprep.mubr.msk.f32.mxu1 %vm8251_vm2, %v9628_v59 }
 0x372   :  { %v3575_v53 = vpop.xlane.xlu1 %3574  ;;  %v3658_v41 = vmul.f32 %v8167_v16, %v9153_v0  ;;  %8174 = vrcp.f32 %v3578_v4  ;;  %7824 = vmatprep.subr.mxu1 %v9628_v59 }
 0x373   :  { %8176 = vrcp.f32 %v3575_v53 }
 0x374   :  { %v8169_v26 = vpop.eup %8168  ;;  %7817 = vmatmul.mubr.msk.f32.vlgmr.msra.gmra.mrb[50].mxu1 %vm817_vm3, %v3658_v41 }
 0x375   :  { %v3656_v11 = vmul.f32 %v8169_v26, %v9159_v60  ;;  %7825 = vmatpush3.msra.mxu1 %v9088_v24  ;;  %v3584_v6 = vpop.xlane.xlu0 %3583  ;;  %7826 = vmatprep.mubr.msk.f32.mxu1 %vm8251_vm2, %v9628_v59 }
 0x376   :  { %v3581_v21 = vpop.xlane.xlu1 %3580  ;;  %8178 = vrcp.f32 %v3584_v6  ;;  %7834 = vmatprep.subr.mxu1 %v9628_v59 }
 0x377   :  { %8180 = vrcp.f32 %v3581_v21  ;;  %7812 = vmatmul.mubr.msk.f32.vlgmr.msra.gmra.mrb[50].mxu0 %vm817_vm3, %v3656_v11 }
 0x378   :  { %v8171_v0 = vpop.eup %8170  ;;  %7820 = vmatpush3.msra.mxu0 %v9082_v19  ;;  %7821 = vmatprep.mubr.msk.f32.mxu0 %vm8251_vm2, %v9628_v59 }
 0x379   :  { %v8173_v60 = vpop.eup %8172  ;;  %v3662_v24 = vmul.f32 %v8171_v0, %v9167_v22  ;;  %v3590_v32 = vpop.xlane.xlu0 %3589  ;;  %7829 = vmatprep.subr.mxu0 %v9628_v59 }
 0x37a   :  { %v3587_v20 = vpop.xlane.xlu1 %3586  ;;  %v3660_v37 = vmul.f32 %v8173_v60, %v9164_v57  ;;  %8182 = vrcp.f32 %v3590_v32  ;;  %v9631_v32 = vld [vmem:[#allocation10_spill] sm:$0xff] }
 0x37b   :  { %8184 = vrcp.f32 %v3587_v20  ;;  %7827 = vmatmul.mubr.msk.f32.vlgmr.msra.gmra.mrb[52].mxu1 %vm817_vm3, %v3662_v24 }
 0x37c   :  { %v8175_v50 = vpop.eup %8174  ;;  %7822 = vmatmul.mubr.msk.f32.vlgmr.msra.gmra.mrb[52].mxu0 %vm817_vm3, %v3660_v37  ;;  %7835 = vmatpush3.msra.mxu1 %v9094_v30 }
 0x37d   :  { %v8177_v19 = vpop.eup %8176  ;;  %v3666_v62 = vmul.f32 %v8175_v50, %v9177_v10  ;;  %7830 = vmatpush3.msra.mxu0 %v9086_v23  ;;  %v3596_v22 = vpop.xlane.xlu0 %3595  ;;  %7831 = vmatprep.mubr.msk.f32.mxu0 %vm8251_vm2, %v9628_v59 }
 0x37e   :  { %v3593_v27 = vpop.xlane.xlu1 %3592  ;;  %v3664_v57 = vmul.f32 %v8177_v19, %v9174_v3  ;;  %8186 = vrcp.f32 %v3596_v22  ;;  %7836 = vmatprep.mubr.msk.f32.mxu1 %vm8251_vm2, %v9628_v59  ;;  %7839 = vmatprep.subr.mxu0 %v9628_v59  ;;  %v9633_v22 = vld [vmem:[#allocation12_spill] sm:$0xff] }
 0x37f   :  { %8188 = vrcp.f32 %v3593_v27  ;;  %7844 = vmatprep.subr.mxu1 %v9628_v59  ;;  %7837 = vmatmul.mubr.msk.f32.vlgmr.msra.gmra.mrb[54].mxu1 %vm817_vm3, %v3666_v62 }
 0x380   :  { %v8179_v30 = vpop.eup %8178  ;;  %7832 = vmatmul.mubr.msk.f32.vlgmr.msra.gmra.mrb[54].mxu0 %vm817_vm3, %v3664_v57  ;;  %7845 = vmatpush3.msra.mxu1 %v9098_v36 }
 0x381   :  { %v8181_v23 = vpop.eup %8180  ;;  %v3670_v10 = vmul.f32 %v8179_v30, %v9187_v43  ;;  %7840 = vmatpush3.msra.mxu0 %v9092_v33  ;;  %v3602_v3 = vpop.xlane.xlu0 %3601  ;;  %7841 = vmatprep.mubr.msk.f32.mxu0 %vm8251_vm2, %v9628_v59 }
 0x382   :  { %v3599_v28 = vpop.xlane.xlu1 %3598  ;;  %v3668_v14 = vmul.f32 %v8181_v23, %v9184_v8  ;;  %8190 = vrcp.f32 %v3602_v3  ;;  %7846 = vmatprep.mubr.msk.f32.mxu1 %vm8251_vm2, %v9628_v59  ;;  %7849 = vmatprep.subr.mxu0 %v9628_v59  ;;  %v9635_v3 = vld [vmem:[#allocation14_spill] sm:$0xff] }
 0x383   :  { %8192 = vrcp.f32 %v3599_v28  ;;  %7854 = vmatprep.subr.mxu1 %v9628_v59  ;;  %7847 = vmatmul.mubr.msk.f32.vlgmr.msra.gmra.mrb[56].mxu1 %vm817_vm3, %v3670_v10 }
 0x384   :  { %v8183_v36 = vpop.eup %8182  ;;  %7842 = vmatmul.mubr.msk.f32.vlgmr.msra.gmra.mrb[56].mxu0 %vm817_vm3, %v3668_v14  ;;  %7855 = vmatpush3.msra.mxu1 %v9104_v40 }
 0x385   :  { %v8185_v33 = vpop.eup %8184  ;;  %v3674_v43 = vmul.f32 %v8183_v36, %v9197_v31  ;;  %7850 = vmatpush3.msra.mxu0 %v9096_v35  ;;  %v3608_v8 = vpop.xlane.xlu0 %3607  ;;  %7851 = vmatprep.mubr.msk.f32.mxu0 %vm8251_vm2, %v9628_v59 }
 0x386   :  { %v3605_v54 = vpop.xlane.xlu1 %3604  ;;  %v3672_v16 = vmul.f32 %v8185_v33, %v9194_v55  ;;  %8194 = vrcp.f32 %v3608_v8  ;;  %7856 = vmatprep.mubr.msk.f32.mxu1 %vm8251_vm2, %v9628_v59  ;;  %7859 = vmatprep.subr.mxu0 %v9628_v59  ;;  %v9637_v8 = vld [vmem:[#allocation16_spill] sm:$0xff] }
 0x387   :  { %8196 = vrcp.f32 %v3605_v54  ;;  %7864 = vmatprep.subr.mxu1 %v9628_v59  ;;  %7857 = vmatmul.mubr.msk.f32.vlgmr.msra.gmra.mrb[58].mxu1 %vm817_vm3, %v3674_v43 }
 0x388   :  { %v8187_v40 = vpop.eup %8186  ;;  %7852 = vmatmul.mubr.msk.f32.vlgmr.msra.gmra.mrb[58].mxu0 %vm817_vm3, %v3672_v16  ;;  %7865 = vmatpush3.msra.mxu1 %v9108_v48 }
 0x389   :  { %v8189_v35 = vpop.eup %8188  ;;  %v3678_v31 = vmul.f32 %v8187_v40, %v9207_v7  ;;  %7860 = vmatpush3.msra.mxu0 %v9102_v39  ;;  %v3614_v55 = vpop.xlane.xlu0 %3613  ;;  %7861 = vmatprep.mubr.msk.f32.mxu0 %vm8251_vm2, %v9628_v59 }
 0x38a   :  { %v3611_v4 = vpop.xlane.xlu1 %3610  ;;  %v3676_v53 = vmul.f32 %v8189_v35, %v9204_v2  ;;  %8198 = vrcp.f32 %v3614_v55  ;;  %7866 = vmatprep.mubr.msk.f32.mxu1 %vm8251_vm2, %v9628_v59  ;;  %7869 = vmatprep.subr.mxu0 %v9628_v59 }
 0x38b   :  { %8200 = vrcp.f32 %v3611_v4  ;;  %7874 = vmatprep.subr.mxu1 %v9628_v59  ;;  %7867 = vmatmul.mubr.msk.f32.vlgmr.msra.gmra.mrb[60].mxu1 %vm817_vm3, %v3678_v31 }
 0x38c   :  { %v8191_v48 = vpop.eup %8190  ;;  %7862 = vmatmul.mubr.msk.f32.vlgmr.msra.gmra.mrb[60].mxu0 %vm817_vm3, %v3676_v53  ;;  %7875 = vmatpush3.msra.mxu1 %v9112_v49  ;;  %v6147_v53 = vld [vmem:[%s9607_s4] sm:$0xff] }
 0x38d   :  { %v8193_v39 = vpop.eup %8192  ;;  %v3682_v7 = vmul.f32 %v8191_v48, %v9217_v51  ;;  %7870 = vmatpush3.msra.mxu0 %v9106_v45  ;;  %v3620_v2 = vpop.xlane.xlu0 %3619  ;;  %7871 = vmatprep.mubr.msk.f32.mxu0 %vm8251_vm2, %v9628_v59  ;;  %v7270_v48 = vld.sshfl [vmem:[%s9605_s2] sm:$0x33 pattern:$0x75316420] }
 0x38e   :  { %v3617_v41 = vpop.xlane.xlu1 %3616  ;;  %v3680_v26 = vmul.f32 %v8193_v39, %v9214_v44  ;;  %8202 = vrcp.f32 %v3620_v2  ;;  %7876 = vmatprep.mubr.msk.f32.mxu1 %vm8251_vm2, %v9628_v59  ;;  %7879 = vmatprep.subr.mxu0 %v9628_v59  ;;  %v8255_v39 = vmov 0  }
 0x38f   :  { %8204 = vrcp.f32 %v3617_v41  ;;  %7884 = vmatprep.subr.mxu1 %v9628_v59  ;;  %7877 = vmatmul.mubr.msk.f32.vlgmr.msra.gmra.mrb[62].mxu1 %vm817_vm3, %v3682_v7  ;;  %v9639_v7 = vld [vmem:[#allocation5_spill] sm:$0xff]  ;;  %v7019_v41 = vcombine.high %v7270_v48, %v7270_v48 }
 0x390   :  { %v8195_v49 = vpop.eup %8194  ;;  %7872 = vmatmul.mubr.msk.f32.vlgmr.msra.gmra.mrb[62].mxu0 %vm817_vm3, %v3680_v26  ;;  %7885 = vmatpush3.msra.mxu1 %v9116_v56  ;;  %v7026_v2 = vrot.slane %v7270_v48, %v9639_v7  ;;  %v9640_v26 = vld [vmem:[#allocation6_spill] sm:$0xff] }
 0x391   :  { %v8197_v45 = vpop.eup %8196  ;;  %v3686_v51 = vmul.f32 %v8195_v49, %v9227_v12  ;;  %7880 = vmatpush3.msra.mxu0 %v9110_v25  ;;  %v3626_v44 = vpop.xlane.xlu0 %3625  ;;  %7881 = vmatprep.mubr.msk.f32.mxu0 %vm8251_vm2, %v9628_v59  ;;  %v9629_v25 = vld [vmem:[#allocation9_spill] sm:$0xff] }
 0x392   :  { %v3623_v11 = vpop.xlane.xlu1 %3622  ;;  %v3684_v6 = vmul.f32 %v8197_v45, %v9224_v38  ;;  %8206 = vrcp.f32 %v3626_v44  ;;  %7886 = vmatprep.mubr.msk.f32.mxu1 %vm8251_vm2, %v9628_v59  ;;  %7889 = vmatprep.subr.mxu0 %v9628_v59  ;;  %v9630_v38 = vld [vmem:[#allocation7_spill] sm:$0xff]  ;;  %v7043_v49 = vrot.slane %v7026_v2, %v9640_v26  ;;  %v7033_v45 = vrot.slane %v7019_v41, %v9639_v7 }
 0x393   :  { %8208 = vrcp.f32 %v3623_v11  ;;  %7894 = vmatprep.subr.mxu1 %v9628_v59  ;;  %7887 = vmatmul.mubr.msk.f32.vlgmr.msra.gmra.mrb[64].mxu1 %vm817_vm3, %v3686_v51  ;;  %v7034_v51 = vcombine.high %v7026_v2, %v7026_v2 }
 0x394   :  { %v8199_v56 = vpop.eup %8198  ;;  %7882 = vmatmul.mubr.msk.f32.vlgmr.msra.gmra.mrb[64].mxu0 %vm817_vm3, %v3684_v6  ;;  %7895 = vmatpush3.msra.mxu1 %v9629_v25  ;;  %v7047_v44 = vrot.slane %v7033_v45, %v9640_v26  ;;  %v7035_v11 = vcombine.high %v7033_v45, %v7033_v45 }
 0x395   :  { %v8201_v12 = vpop.eup %8200  ;;  %v3690_v21 = vmul.f32 %v8199_v56, %v9237_v15  ;;  %7890 = vmatpush3.msra.mxu0 %v9630_v38  ;;  %v3632_v0 = vpop.xlane.xlu0 %3631  ;;  %7891 = vmatprep.mubr.msk.f32.mxu0 %vm8251_vm2, %v9628_v59  ;;  %v7051_v56 = vrot.slane %v7034_v51, %v9640_v26  ;;  %v6151_v38 = vld [vmem:[%s9607_s4 + $0x20] sm:$0xff] }
 0x396   :  { %v3629_v60 = vpop.xlane.xlu1 %3628  ;;  %v3688_v24 = vmul.f32 %v8201_v12, %v9234_v52  ;;  %8210 = vrcp.f32 %v3632_v0  ;;  %7896 = vmatprep.mubr.msk.f32.mxu1 %vm8251_vm2, %v9628_v59  ;;  %7899 = vmatprep.subr.mxu0 %v9628_v59  ;;  %v9632_v52 = vld [vmem:[#allocation8_spill] sm:$0xff]  ;;  %v7055_v6 = vrot.slane %v7035_v11, %v9640_v26 }
 0x397   :  { %8212 = vrcp.f32 %v3629_v60  ;;  %7904 = vmatprep.subr.mxu1 %v9628_v59  ;;  %7897 = vmatmul.mubr.msk.f32.vlgmr.msra.gmra.mrb[66].mxu1 %vm817_vm3, %v3690_v21 }
 0x398   :  { %v8203_v15 = vpop.eup %8202  ;;  %7892 = vmatmul.mubr.msk.f32.vlgmr.msra.gmra.mrb[66].mxu0 %vm817_vm3, %v3688_v24  ;;  %7905 = vmatpush3.msra.mxu1 %v9631_v32 }
 0x399   :  { %v8205_v20 = vpop.eup %8204  ;;  %v3694_v37 = vmul.f32 %v8203_v15, %v9247_v61  ;;  %7900 = vmatpush3.msra.mxu0 %v9632_v52  ;;  %v3638_v50 = vpop.xlane.xlu0 %3637  ;;  %7901 = vmatprep.mubr.msk.f32.mxu0 %vm8251_vm2, %v9628_v59 }
 0x39a   :  { %v3635_v19 = vpop.xlane.xlu1 %3634  ;;  %v3692_v62 = vmul.f32 %v8205_v20, %v9244_v1  ;;  %8214 = vrcp.f32 %v3638_v50  ;;  %7906 = vmatprep.mubr.msk.f32.mxu1 %vm8251_vm2, %v9628_v59  ;;  %7909 = vmatprep.subr.mxu0 %v9628_v59  ;;  %v9634_v1 = vld [vmem:[#allocation11_spill] sm:$0xff] }
 0x39b   :  { %8216 = vrcp.f32 %v3635_v19  ;;  %7914 = vmatprep.subr.mxu1 %v9628_v59  ;;  %7907 = vmatmul.mubr.msk.f32.vlgmr.msra.gmra.mrb[68].mxu1 %vm817_vm3, %v3694_v37  ;;  %v6152_v19 = vld [vmem:[%s9607_s4 + $0x28] sm:$0xff] }
 0x39c   :  { %v8207_v61 = vpop.eup %8206  ;;  %7902 = vmatmul.mubr.msk.f32.vlgmr.msra.gmra.mrb[68].mxu0 %vm817_vm3, %v3692_v62  ;;  %7915 = vmatpush3.msra.mxu1 %v9633_v22 }
 0x39d   :  { %v8209_v27 = vpop.eup %8208  ;;  %v3698_v57 = vmul.f32 %v8207_v61, %v9257_v18  ;;  %7910 = vmatpush3.msra.mxu0 %v9634_v1  ;;  %v3644_v30 = vpop.xlane.xlu0 %3643  ;;  %7911 = vmatprep.mubr.msk.f32.mxu0 %vm8251_vm2, %v9628_v59 }
 0x39e   :  { %v3641_v23 = vpop.xlane.xlu1 %3640  ;;  %v3696_v10 = vmul.f32 %v8209_v27, %v9254_v17  ;;  %8218 = vrcp.f32 %v3644_v30  ;;  %7916 = vmatprep.mubr.msk.f32.mxu1 %vm8251_vm2, %v9628_v59  ;;  %7919 = vmatprep.subr.mxu0 %v9628_v59  ;;  %v9636_v17 = vld [vmem:[#allocation13_spill] sm:$0xff] }
 0x39f   :  { %8220 = vrcp.f32 %v3641_v23  ;;  %7924 = vmatprep.subr.mxu1 %v9628_v59  ;;  %7917 = vmatmul.mubr.msk.f32.vlgmr.msra.gmra.mrb[70].mxu1 %vm817_vm3, %v3698_v57 }
 0x3a0   :  { %v8211_v18 = vpop.eup %8210  ;;  %7912 = vmatmul.mubr.msk.f32.vlgmr.msra.gmra.mrb[70].mxu0 %vm817_vm3, %v3696_v10  ;;  %7925 = vmatpush3.msra.mxu1 %v9635_v3  ;;  %v6153_v10 = vld [vmem:[%s9607_s4 + $0x30] sm:$0xff] }
 0x3a1   :  { %v8213_v28 = vpop.eup %8212  ;;  %v3702_v14 = vmul.f32 %v8211_v18, %v9266_v5  ;;  %7920 = vmatpush3.msra.mxu0 %v9636_v17  ;;  %v3650_v36 = vpop.xlane.xlu0 %3649  ;;  %7921 = vmatprep.mubr.msk.f32.mxu0 %vm8251_vm2, %v9628_v59 }
 0x3a2   :  { %v3647_v33 = vpop.xlane.xlu1 %3646  ;;  %v3700_v43 = vmul.f32 %v8213_v28, %v9263_v58  ;;  %8222 = vrcp.f32 %v3650_v36  ;;  %7926 = vmatprep.mubr.msk.f32.mxu1 %vm8251_vm2, %v9628_v59  ;;  %7929 = vmatprep.subr.mxu0 %v9628_v59  ;;  %v9638_v58 = vld [vmem:[#allocation15_spill] sm:$0xff] }
 0x3a3   :  { %8224 = vrcp.f32 %v3647_v33  ;;  %7934 = vmatprep.subr.mxu1 %v9628_v59  ;;  %7927 = vmatmul.mubr.msk.f32.vlgmr.msra.gmra.mrb[72].mxu1 %vm817_vm3, %v3702_v14 }
 0x3a4   :  { %v8215_v5 = vpop.eup %8214  ;;  %7922 = vmatmul.mubr.msk.f32.vlgmr.msra.gmra.mrb[72].mxu0 %vm817_vm3, %v3700_v43  ;;  %7935 = vmatpush3.msra.mxu1 %v9637_v8 }
 0x3a5   :  { %v8217_v54 = vpop.eup %8216  ;;  %v3706_v16 = vmul.f32 %v8215_v5, %v9274_v34  ;;  %7930 = vmatpush3.msra.mxu0 %v9638_v58  ;;  %7931 = vmatprep.mubr.msk.f32.mxu0 %vm8251_vm2, %v9628_v59  ;;  %v5996_v4 = vpop.permute.xlu0 %5995  ;;  %v6154_v5 = vld [vmem:[%s9607_s4 + $0x38] sm:$0xff] }
 0x3a6   :  { %v3704_v40 = vmul.f32 %v8217_v54, %v9272_v47  ;;  %7936 = vmatprep.mubr.msk.f32.mxu1 %vm8251_vm2, %v9628_v59  ;;  %7939 = vmatprep.subr.mxu0 %v9628_v59  ;;  %v6072_v55 = vpop.permute.xlu1 %6071 }
 0x3a7   :  { %7944 = vmatprep.subr.mxu1 %v9628_v59  ;;  %7937 = vmatmul.mubr.msk.f32.vlgmr.msra.gmra.mrb[74].mxu1 %vm817_vm3, %v3706_v16 }
 0x3a8   :  { %v8219_v35 = vpop.eup %8218  ;;  %7932 = vmatmul.mubr.msk.f32.vlgmr.msra.gmra.mrb[74].mxu0 %vm817_vm3, %v3704_v40  ;;  %7945 = vmatpush3.msra.mxu1 %v9300_v29 }
 0x3a9   :  { %v8221_v34 = vpop.eup %8220  ;;  %v3710_v31 = vmul.f32 %v8219_v35, %v9282_v42  ;;  %7940 = vmatpush3.msra.mxu0 %v9302_v13  ;;  %7941 = vmatprep.mubr.msk.f32.mxu0 %vm8251_vm2, %v9628_v59 }
 0x3aa   :  { %v3708_v47 = vmul.f32 %v8221_v34, %v9280_v9  ;;  %7946 = vmatprep.mubr.msk.f32.mxu1 %vm8251_vm2, %v9628_v59  ;;  %7949 = vmatprep.subr.mxu0 %v9628_v59 }
 0x3ab   :  { %7954 = vmatprep.subr.mxu1 %v9628_v59  ;;  %7947 = vmatmul.mubr.msk.f32.vlgmr.msra.gmra.mrb[76].mxu1 %vm817_vm3, %v3710_v31 }
 0x3ac   :  { %v8223_v29 = vpop.eup %8222  ;;  %7942 = vmatmul.mubr.msk.f32.vlgmr.msra.gmra.mrb[76].mxu0 %vm817_vm3, %v3708_v47  ;;  %7955 = vmatpush3.msra.mxu1 %v6072_v55 }
 0x3ad   :  { %v8225_v42 = vpop.eup %8224  ;;  %v3714_v13 = vmul.f32 %v8223_v29, %v9290_v63  ;;  %7950 = vmatpush3.msra.mxu0 %v5996_v4  ;;  %7951 = vmatprep.mubr.msk.f32.mxu0 %vm8251_vm2, %v9628_v59  ;;  %v6148_v63 = vld [vmem:[%s9607_s4 + $0x8] sm:$0xff] }
 0x3ae   :  { %v3712_v9 = vmul.f32 %v8225_v42, %v9288_v46  ;;  %7956 = vmatprep.mubr.msk.f32.mxu1 %vm8251_vm2, %v9628_v59  ;;  %7959 = vmatprep.subr.mxu0 %v6147_v53  ;;  %v6149_v46 = vld [vmem:[%s9607_s4 + $0x10] sm:$0xff]  ;;  %v6150_v59 = vld [vmem:[%s9607_s4 + $0x18] sm:$0xff] }
 0x3af   :  { %7957 = vmatmul.mubr.msk.f32.vlgmr.msra.gmra.mrb[78].mxu1 %vm817_vm3, %v3714_v13  ;;  %7967 = vmatprep.subr.mxu1 %v6148_v63 }
 0x3b0   :  { %7952 = vmatmul.mubr.msk.f32.vlgmr.msra.gmra.mrb[78].mxu0 %vm817_vm3, %v3712_v9  ;;  %7968 = vmatpush3.msra.mxu1 %v6148_v63 }
 0x3b1   :  { %7960 = vmatpush3.msra.mxu0 %v6147_v53  ;;  %7983 = vmatprep.subr.mxu1 %v6150_v59 }
 0x3b2   :  { %7975 = vmatprep.subr.mxu0 %v6149_v46  ;;  %8097 = vset.pattern.permute.xlu1 %v8255_v39 }
 0x3b3   :  { %8096 = vset.pattern.permute.xlu0 %v8255_v39  ;;  %7061 = vperm.xlu1 %8097, %v7047_v44  }
 0x3b4   :  { %7057 = vperm.xlu0 %8096, %v7043_v49  }
 0x3b7   :  { %7065 = vperm.xlu1 %8097, %v7051_v56  }
 0x3b8   :  { %7069 = vperm.xlu0 %8096, %v7055_v6  }
 0x43e   :  { %v3787_v25 = vpop.f32.mrb[48].mxu0 }
 0x43f   :  { %v7803_v12 = vpop.f32.mrb[49].mxu0  ;;  %7961 = vmatprep.mubr.msk.f32.mxu0 %vm817_vm3, %v3787_v25 }
 0x443   :  { %v3863_v21 = vpop.f32.mrb[48].mxu1 }
 0x444   :  { %v7808_v0 = vpop.f32.mrb[49].mxu1  ;;  %7962 = vmatmul.mubr.msk.f32.vlgmr.msra.gmra.mrb[80].mxu0 %vm817_vm3, %v3863_v21 }
 0x445   :  { %7976 = vmatpush3.msra.mxu0 %v6149_v46 }
 0x446   :  { %7991 = vmatprep.subr.mxu0 %v6151_v38 }
 0x447   :  { %v4015_v60 = vpop.f32.mrb[50].mxu1 }
 0x448   :  { %v7818_v24 = vpop.f32.mrb[51].mxu1 }
 0x44a   :  { %v3939_v15 = vpop.f32.mrb[50].mxu0 }
 0x44b   :  { %v7813_v32 = vpop.f32.mrb[51].mxu0  ;;  %7964 = vmatprep.mubr.msk.f32.mxu0 %vm817_vm3, %v3939_v15 }
 0x44c   :  { %7965 = vmatmul.mubr.msk.f32.gmra.mrb[82].mxu0 %vm817_vm3, %v4015_v60 }
 0x44e   :  { %v4167_v20 = vpop.f32.mrb[52].mxu1 }
 0x44f   :  { %v4091_v37 = vpop.f32.mrb[52].mxu0  ;;  %v7828_v52 = vpop.f32.mrb[53].mxu1 }
 0x450   :  { %v7823_v50 = vpop.f32.mrb[53].mxu0  ;;  %7969 = vmatprep.mubr.msk.f32.mxu1 %vm817_vm3, %v4091_v37 }
 0x451   :  { %7970 = vmatmul.mubr.msk.f32.vlgmr.msra.gmra.mrb[80].mxu1 %vm817_vm3, %v4167_v20 }
 0x452   :  { %v4319_v62 = vpop.f32.mrb[54].mxu1  ;;  %7984 = vmatpush3.msra.mxu1 %v6150_v59 }
 0x453   :  { %v4243_v61 = vpop.f32.mrb[54].mxu0  ;;  %v7838_v22 = vpop.f32.mrb[55].mxu1  ;;  %7999 = vmatprep.subr.mxu1 %v6152_v19 }
 0x454   :  { %v7833_v27 = vpop.f32.mrb[55].mxu0  ;;  %7972 = vmatprep.mubr.msk.f32.mxu1 %vm817_vm3, %v4243_v61 }
 0x455   :  { %7973 = vmatmul.mubr.msk.f32.gmra.mrb[82].mxu1 %vm817_vm3, %v4319_v62 }
 0x456   :  { %v4471_v57 = vpop.f32.mrb[56].mxu1 }
 0x457   :  { %v4395_v1 = vpop.f32.mrb[56].mxu0  ;;  %v7848_v30 = vpop.f32.mrb[57].mxu1 }
 0x458   :  { %v7843_v23 = vpop.f32.mrb[57].mxu0  ;;  %7977 = vmatprep.mubr.msk.f32.mxu0 %vm817_vm3, %v4395_v1 }
 0x459   :  { %7978 = vmatmul.mubr.msk.f32.vlgmr.msra.gmra.mrb[84].mxu0 %vm817_vm3, %v4471_v57 }
 0x45a   :  { %v4623_v18 = vpop.f32.mrb[58].mxu1  ;;  %7992 = vmatpush3.msra.mxu0 %v6151_v38 }
 0x45b   :  { %v4547_v3 = vpop.f32.mrb[58].mxu0  ;;  %v7858_v28 = vpop.f32.mrb[59].mxu1  ;;  %8007 = vmatprep.subr.mxu0 %v6153_v10 }
 0x45c   :  { %v7853_v14 = vpop.f32.mrb[59].mxu0  ;;  %7980 = vmatprep.mubr.msk.f32.mxu0 %vm817_vm3, %v4547_v3 }
 0x45d   :  { %7981 = vmatmul.mubr.msk.f32.gmra.mrb[86].mxu0 %vm817_vm3, %v4623_v18 }
 0x45e   :  { %v4775_v17 = vpop.f32.mrb[60].mxu1 }
 0x45f   :  { %v4699_v36 = vpop.f32.mrb[60].mxu0  ;;  %v7868_v33 = vpop.f32.mrb[61].mxu1 }
 0x460   :  { %v7863_v43 = vpop.f32.mrb[61].mxu0  ;;  %7985 = vmatprep.mubr.msk.f32.mxu1 %vm817_vm3, %v4699_v36 }
 0x461   :  { %7986 = vmatmul.mubr.msk.f32.vlgmr.msra.gmra.mrb[84].mxu1 %vm817_vm3, %v4775_v17 }
 0x462   :  { %v4927_v8 = vpop.f32.mrb[62].mxu1  ;;  %8000 = vmatpush3.msra.mxu1 %v6152_v19 }
 0x463   :  { %v4851_v54 = vpop.f32.mrb[62].mxu0  ;;  %v7878_v16 = vpop.f32.mrb[63].mxu1  ;;  %8015 = vmatprep.subr.mxu1 %v6154_v5 }
 0x464   :  { %v7873_v58 = vpop.f32.mrb[63].mxu0  ;;  %7988 = vmatprep.mubr.msk.f32.mxu1 %vm817_vm3, %v4851_v54 }
 0x465   :  { %7989 = vmatmul.mubr.msk.f32.gmra.mrb[86].mxu1 %vm817_vm3, %v4927_v8 }
 0x466   :  { %v5079_v40 = vpop.f32.mrb[64].mxu1 }
 0x467   :  { %v5003_v35 = vpop.f32.mrb[64].mxu0  ;;  %v7888_v34 = vpop.f32.mrb[65].mxu1 }
 0x468   :  { %v7883_v31 = vpop.f32.mrb[65].mxu0  ;;  %7993 = vmatprep.mubr.msk.f32.mxu0 %vm817_vm3, %v5003_v35 }
 0x469   :  { %7994 = vmatmul.mubr.msk.f32.vlgmr.msra.gmra.mrb[88].mxu0 %vm817_vm3, %v5079_v40 }
 0x46a   :  { %v5231_v47 = vpop.f32.mrb[66].mxu1  ;;  %8008 = vmatpush3.msra.mxu0 %v6153_v10 }
 0x46b   :  { %v5155_v55 = vpop.f32.mrb[66].mxu0  ;;  %v7898_v29 = vpop.f32.mrb[67].mxu1 }
 0x46c   :  { %v7893_v4 = vpop.f32.mrb[67].mxu0  ;;  %7996 = vmatprep.mubr.msk.f32.mxu0 %vm817_vm3, %v5155_v55 }
 0x46d   :  { %7997 = vmatmul.mubr.msk.f32.gmra.mrb[90].mxu0 %vm817_vm3, %v5231_v47 }
 0x46e   :  { %v5383_v42 = vpop.f32.mrb[68].mxu1 }
 0x46f   :  { %v5307_v13 = vpop.f32.mrb[68].mxu0  ;;  %v7908_v9 = vpop.f32.mrb[69].mxu1 }
 0x470   :  { %v7903_v53 = vpop.f32.mrb[69].mxu0  ;;  %8001 = vmatprep.mubr.msk.f32.mxu1 %vm817_vm3, %v5307_v13 }
 0x471   :  { %8002 = vmatmul.mubr.msk.f32.vlgmr.msra.gmra.mrb[88].mxu1 %vm817_vm3, %v5383_v42 }
 0x472   :  { %v5535_v63 = vpop.f32.mrb[70].mxu1  ;;  %8016 = vmatpush3.msra.mxu1 %v6154_v5 }
 0x473   :  { %v5459_v46 = vpop.f32.mrb[70].mxu0  ;;  %v7918_v59 = vpop.f32.mrb[71].mxu1 }
 0x474   :  { %v7913_v48 = vpop.f32.mrb[71].mxu0  ;;  %8004 = vmatprep.mubr.msk.f32.mxu1 %vm817_vm3, %v5459_v46 }
 0x475   :  { %8005 = vmatmul.mubr.msk.f32.gmra.mrb[90].mxu1 %vm817_vm3, %v5535_v63 }
 0x476   :  { %v5687_v39 = vpop.f32.mrb[72].mxu1 }
 0x477   :  { %v5611_v7 = vpop.f32.mrb[72].mxu0  ;;  %v7928_v2 = vpop.f32.mrb[73].mxu1 }
 0x478   :  { %v7923_v41 = vpop.f32.mrb[73].mxu0  ;;  %8009 = vmatprep.mubr.msk.f32.mxu0 %vm817_vm3, %v5611_v7 }
 0x479   :  { %8010 = vmatmul.mubr.msk.f32.vlgmr.msra.gmra.mrb[92].mxu0 %vm817_vm3, %v5687_v39 }
 0x47a   :  { %v5839_v26 = vpop.f32.mrb[74].mxu1 }
 0x47b   :  { %v5763_v49 = vpop.f32.mrb[74].mxu0  ;;  %v7938_v45 = vpop.f32.mrb[75].mxu1 }
 0x47c   :  { %v7933_v51 = vpop.f32.mrb[75].mxu0  ;;  %8012 = vmatprep.mubr.msk.f32.mxu0 %vm817_vm3, %v5763_v49 }
 0x47d   :  { %8013 = vmatmul.mubr.msk.f32.gmra.mrb[94].mxu0 %vm817_vm3, %v5839_v26 }
 0x47e   :  { %v5991_v44 = vpop.f32.mrb[76].mxu1 }
 0x47f   :  { %v5915_v11 = vpop.f32.mrb[76].mxu0  ;;  %v7948_v6 = vpop.f32.mrb[77].mxu1 }
 0x480   :  { %v7943_v56 = vpop.f32.mrb[77].mxu0  ;;  %8017 = vmatprep.mubr.msk.f32.mxu1 %vm817_vm3, %v5915_v11 }
 0x481   :  { %8018 = vmatmul.mubr.msk.f32.vlgmr.msra.gmra.mrb[92].mxu1 %vm817_vm3, %v5991_v44 }
 0x482   :  { %v6143_v25 = vpop.f32.mrb[78].mxu1 }
 0x483   :  { %v6067_v12 = vpop.f32.mrb[78].mxu0  ;;  %v7958_v21 = vpop.f32.mrb[79].mxu1 }
 0x484   :  { %v7953_v38 = vpop.f32.mrb[79].mxu0  ;;  %8020 = vmatprep.mubr.msk.f32.mxu1 %vm817_vm3, %v6067_v12 }
 0x485   :  { %8021 = vmatmul.mubr.msk.f32.gmra.mrb[94].mxu1 %vm817_vm3, %v6143_v25 }
 0x517   :  { %v7963_v0 = vpop.f32.mrb[80].mxu0 }
 0x518   :  { %v6233_v60 = vpop.f32.mrb[81].mxu0  ;;  %v6939_v20 = vsel %vm6931_vm4, %v7963_v0, 0.0 }
 0x519   :  { %v6932_v50 = vsel %vm6931_vm4, %v6233_v60, 0.0 }
 0x51f   :  { %v7966_v24 = vpop.f32.mrb[82].mxu0 }
 0x520   :  { %v6243_v15 = vpop.f32.mrb[83].mxu0  ;;  %v6953_v27 = vsel %vm6931_vm4, %v7966_v24, 0.0 }
 0x521   :  { %v6946_v30 = vsel %vm6931_vm4, %v6243_v15, 0.0 }
 0x524   :  { %v7971_v32 = vpop.f32.mrb[80].mxu1 }
 0x525   :  { %v6940_v37 = vsel %vm6931_vm4, %v7971_v32, 0.0  ;;  %v6330_v52 = vpop.f32.mrb[81].mxu1 }
 0x526   :  { %v6941_v19 = vadd.f32 %v6940_v37, %v6939_v20  ;;  %v6933_v62 = vsel %vm6931_vm4, %v6330_v52, 0.0 }
 0x527   :  { %v6934_v61 = vadd.f32 %v6933_v62, %v6932_v50 }
 0x528   :  { %v7974_v22 = vpop.f32.mrb[82].mxu1 }
 0x529   :  { %v6954_v57 = vsel %vm6931_vm4, %v7974_v22, 0.0  ;;  %v6340_v1 = vpop.f32.mrb[83].mxu1 }
 0x52a   :  { %v6955_v23 = vadd.f32 %v6954_v57, %v6953_v27  ;;  %v6947_v10 = vsel %vm6931_vm4, %v6340_v1, 0.0  ;;  %v7268_v27 = vld [vmem:[%s9608_s5] ss:$0 sm:$0xff]  ;;  %v7269_v1 = vld [vmem:[%s9608_s5 + $0x1] ss:$0 sm:$0xff]  ;;  %s8256_s5 = smov [#allocation2]  }
 0x52b   :  { %v6948_v18 = vadd.f32 %v6947_v10, %v6946_v30  ;;  %s7089_s8 = sshll.u32 %s8256_s5, 4  ;;  %s7090_s8 = int_to_ptr.vmem [resolvable:$true] %s7089_s8 }
 0x52c   :  { %v7979_v3 = vpop.f32.mrb[84].mxu0  ;;  %s8226_s9 = scalar_lea.vmem %s7090_s8, 512  ;;  %p8231_p1 = scmp.lt.s32.totalorder %s7090_s8, %s7090_s8 }
 0x52d   :  { %v6942_v28 = vsel %vm6931_vm4, %v7979_v3, 0.0  ;;  %v6427_v14 = vpop.f32.mrb[85].mxu0  ;;  %p8227_p0 = scmp.ne.s32.totalorder %s7090_s8, %s8226_s9  ;;  %p8232_p2 = scmp.lt.s32.totalorder %s8226_s9, %s8226_s9 }
 0x52e   :  { %v6943_v17 = vadd.f32 %v6942_v28, %v6941_v19  ;;  %v6935_v36 = vsel %vm6931_vm4, %v6427_v14, 0.0 }
 0x52f   :  { %v6936_v33 = vadd.f32 %v6935_v36, %v6934_v61  ;;  %p8233_p3 = por %p8232_p2, %p8231_p1 }
 0x530   :  { %v7982_v43 = vpop.f32.mrb[86].mxu0 }
 0x531   :  { %v6956_v5 = vsel %vm6931_vm4, %v7982_v43, 0.0  ;;  %v6437_v8 = vpop.f32.mrb[87].mxu0  ;;  %p8234_p4 = pnand %p8233_p3, %p8227_p0 }
 0x532   :  { %v6957_v54 = vadd.f32 %v6956_v5, %v6955_v23  ;;  %v6949_v16 = vsel %vm6931_vm4, %v6437_v8, 0.0  ;;  %v7058_v5 = vpop.permute.xlu0 %7057 }
 0x533   :  { %v6950_v58 = vadd.f32 %v6949_v16, %v6948_v18  ;;  %v7062_v16 = vpop.permute.xlu1 %7061 }
 0x534   :  { %v7987_v40 = vpop.f32.mrb[84].mxu1 }
 0x535   :  { %v6944_v35 = vsel %vm6931_vm4, %v7987_v40, 0.0  ;;  %v6524_v34 = vpop.f32.mrb[85].mxu1 }
 0x536   :  { %v6945_v31 = vadd.f32 %v6944_v35, %v6943_v17  ;;  %v6937_v47 = vsel %vm6931_vm4, %v6524_v34, 0.0 }
 0x537   :  { %v6938_v55 = vadd.f32 %v6937_v47, %v6936_v33 }
 0x538   :  { %v7990_v29 = vpop.f32.mrb[86].mxu1  ;;  %v7003_v3 = vadd.f32 %v7268_v27, %v6945_v31 }
 0x539   :  { %v6958_v4 = vsel %vm6931_vm4, %v7990_v29, 0.0  ;;  %v6534_v42 = vpop.f32.mrb[87].mxu1  ;;  %v7002_v17 = vadd.f32 %v7268_v27, %v6938_v55 }
 0x53a   :  { %v6959_v13 = vadd.f32 %v6958_v4, %v6957_v54  ;;  %v6951_v9 = vsel %vm6931_vm4, %v6534_v42, 0.0 }
 0x53b   :  { %v6952_v53 = vadd.f32 %v6951_v9, %v6950_v58 }
 0x53c   :  { %v7995_v63 = vpop.f32.mrb[88].mxu0  ;;  %v7005_v34 = vadd.f32 %v7268_v27, %v6959_v13 }
 0x53d   :  { %v6621_v46 = vpop.f32.mrb[89].mxu0  ;;  %v6967_v7 = vsel %vm6931_vm4, %v7995_v63, 0.0  ;;  %v7004_v4 = vadd.f32 %v7268_v27, %v6952_v53 }
 0x53e   :  { %v6960_v26 = vsel %vm6931_vm4, %v6621_v46, 0.0  ;;  %v7070_v46 = vpop.permute.xlu0 %7069 }
 0x540   :  { %v7998_v59 = vpop.f32.mrb[90].mxu0 }
 0x541   :  { %v6631_v48 = vpop.f32.mrb[91].mxu0  ;;  %v6981_v11 = vsel %vm6931_vm4, %v7998_v59, 0.0 }
 0x542   :  { %v6974_v25 = vsel %vm6931_vm4, %v6631_v48, 0.0 }
 0x544   :  { %v8003_v39 = vpop.f32.mrb[88].mxu1 }
 0x545   :  { %v6968_v2 = vsel %vm6931_vm4, %v8003_v39, 0.0  ;;  %v6718_v41 = vpop.f32.mrb[89].mxu1  ;;  %v7066_v39 = vpop.permute.xlu1 %7065 }
 0x546   :  { %v6969_v49 = vadd.f32 %v6968_v2, %v6967_v7  ;;  %v6961_v45 = vsel %vm6931_vm4, %v6718_v41, 0.0 }
 0x547   :  { %v6962_v51 = vadd.f32 %v6961_v45, %v6960_v26 }
 0x548   :  { %v8006_v44 = vpop.f32.mrb[90].mxu1 }
 0x549   :  { %v6982_v6 = vsel %vm6931_vm4, %v8006_v44, 0.0  ;;  %v6728_v56 = vpop.f32.mrb[91].mxu1 }
 0x54a   :  { %v6983_v12 = vadd.f32 %v6982_v6, %v6981_v11  ;;  %v6975_v21 = vsel %vm6931_vm4, %v6728_v56, 0.0 }
 0x54b   :  { %v6976_v38 = vadd.f32 %v6975_v21, %v6974_v25 }
 0x54c   :  { %v8011_v0 = vpop.f32.mrb[92].mxu0 }
 0x54d   :  { %v6970_v60 = vsel %vm6931_vm4, %v8011_v0, 0.0  ;;  %v6815_v24 = vpop.f32.mrb[93].mxu0 }
 0x54e   :  { %v6971_v15 = vadd.f32 %v6970_v60, %v6969_v49  ;;  %v6963_v32 = vsel %vm6931_vm4, %v6815_v24, 0.0 }
 0x54f   :  { %v6964_v20 = vadd.f32 %v6963_v32, %v6962_v51 }
 0x550   :  { %v8014_v37 = vpop.f32.mrb[94].mxu0 }
 0x551   :  { %v6984_v52 = vsel %vm6931_vm4, %v8014_v37, 0.0  ;;  %v6825_v50 = vpop.f32.mrb[95].mxu0 }
 0x552   :  { %v6985_v19 = vadd.f32 %v6984_v52, %v6983_v12  ;;  %v6977_v62 = vsel %vm6931_vm4, %v6825_v50, 0.0 }
 0x553   :  { %v6978_v61 = vadd.f32 %v6977_v62, %v6976_v38 }
 0x554   :  { %v8019_v22 = vpop.f32.mrb[92].mxu1 }
 0x555   :  { %v6972_v57 = vsel %vm6931_vm4, %v8019_v22, 0.0  ;;  %v6912_v30 = vpop.f32.mrb[93].mxu1 }
 0x556   :  { %v6973_v23 = vadd.f32 %v6972_v57, %v6971_v15  ;;  %v6965_v10 = vsel %vm6931_vm4, %v6912_v30, 0.0 }
 0x557   :  { %v6966_v18 = vadd.f32 %v6965_v10, %v6964_v20 }
 0x558   :  { %v7007_v28 = vadd.f32 %v7269_v1, %v6973_v23  ;;  %v8022_v14 = vpop.f32.mrb[94].mxu1 }
 0x559   :  { %v7006_v36 = vadd.f32 %v7269_v1, %v6966_v18  ;;  %v6986_v33 = vsel %vm6931_vm4, %v8022_v14, 0.0  ;;  %v6922_v43 = vpop.f32.mrb[95].mxu1 }
 0x55a   :  { %v6987_v8 = vadd.f32 %v6986_v33, %v6985_v19  ;;  %v6979_v54 = vsel %vm6931_vm4, %v6922_v43, 0.0  ;;  %v7037_v58 = vsub.f32 %v7007_v28, %v7003_v3 }
 0x55b   :  { %v6980_v40 = vadd.f32 %v6979_v54, %v6978_v61  ;;  %v7036_v35 = vsub.f32 %v7006_v36, %v7002_v17 }
 0x55c   :  { %v7009_v47 = vadd.f32 %v7269_v1, %v6987_v8  ;;  %v7073_v29 = vmul.f32 %v7062_v16, %v7037_v58 }
 0x55d   :  { %v7008_v31 = vadd.f32 %v7269_v1, %v6980_v40  ;;  %v7072_v42 = vmul.f32 %v7058_v5, %v7036_v35 }
 0x55e   :  { %v7077_v9 = vadd.f32 %v7073_v29, %v7003_v3  ;;  %v7039_v55 = vsub.f32 %v7009_v47, %v7005_v34 }
 0x55f   :  { %v7076_v63 = vadd.f32 %v7072_v42, %v7002_v17  ;;  %v7038_v59 = vsub.f32 %v7008_v31, %v7004_v4 }
 0x560   :  { %7081 = vst.msk [vmem:[#allocation2 + $0x8] sm:$0xff] %vm6931_vm4, %v7077_v9  ;;  %v7075_v48 = vmul.f32 %v7070_v46, %v7039_v55 }
 0x561   :  { %7080 = vst.msk [vmem:[#allocation2] sm:$0xff] %vm6931_vm4, %v7076_v63  ;;  %v7074_v7 = vmul.f32 %v7066_v39, %v7038_v59 }
 0x562   :  { %v7079_v13 = vadd.f32 %v7075_v48, %v7005_v34 }
 0x563   :  { %v7078_v2 = vadd.f32 %v7074_v7, %v7004_v4 }
 0x564   :  { %7083 = vst.msk [vmem:[#allocation2 + $0x18] sm:$0xff] %vm6931_vm4, %v7079_v13 }
 0x565   :  { %7082 = vst.msk [vmem:[#allocation2 + $0x10] sm:$0xff] %vm6931_vm4, %v7078_v2 }
 0x566   :  { %8237 = shalt.err (!%p8234_p4)
}
 0x567   :  { %s8238_s11 = scalar_lea.hbm %s9609_s6, 512 }
 0x568   :  { %p8239_p5 = scmp.ne.s32.totalorder %s9609_s6, %s8238_s11  ;;  %p8242_p6 = scmp.lt.u32.totalorder %s8238_s11, %s9609_s6 }
 0x56a   :  { %p8244_p7 = pnand %p8242_p6, %p8239_p5 }
 0x56c   :  { %8247 = shalt.err (!%p8244_p7)
}
 0x56d   :  { %s8257_s15 = smov 128   ;;  %s8258_s16 = smov 8  }
 0x56e   :  { %7095 = dma.vmem_to_hbm [thread:$0]  %s7090_s8, 512, %s9609_s6, [#allocation3], %s8257_s15, %s8257_s15, %s8258_s16  }
 0x56f   :  { %8248 = dma.done.wait [#allocation3], 512  }
 0x570   :  { %8249 = vsyncadd [#allocation3], 4294966784 }
 0x571   :  { %7099 = vsyncpa [#allocation3], 1 }

</bundles_post_ra>
